<compile_context>
chip_gen: v7x
topology: tpu7x:2x2x1
jax: 0.10.0
libtpu: 0.0.40
codegen_flags: <defaults>
</compile_context>

<pallas_src>
import math
import functools

import jax
import jax.numpy as jnp
from jax import lax
from jax.scipy.special import erf
from jax.experimental import pallas as pl
from jax.experimental.pallas import tpu as pltpu

EPS = 1e-12  # TF-style layernorm epsilon (inside the sqrt), as in the PyTorch module


def _gelu_exact(x):
    # exact (erf-based) gelu, matching the HuggingFace implementation in models.py
    return x * 0.5 * (1.0 + erf(x / math.sqrt(2.0)))


def _layernorm(x, gamma, beta):
    u = jnp.mean(x, axis=-1, keepdims=True)
    c = x - u
    s = jnp.mean(c * c, axis=-1, keepdims=True)
    return gamma * (c * lax.rsqrt(s + EPS)) + beta


# ---------------- fused forward kernel: embeddings + n_layers FourierBlocks ----------------
def fourier_former_kernel(n_heads, n_layers, approx_gelu,
                          e1_ref, pos_ref, seg_ref, mask_ref,
                          tw2_ref, tb2_ref, ge_ref, be_ref,
                          wqkv_ref, bqkv_ref, wo_ref, bo_ref,
                          g1_ref, b1_ref,
                          w1_ref, fb1_ref, w2_ref, fb2_ref,
                          g2_ref, b2_ref,
                          out_ref):
    S, H = pos_ref.shape
    nh = n_heads
    d = H // nh
    scale = 0.5 / math.sqrt(d)            # Gaussian-kernel bandwidth 1/(2*sqrt(d))
    mm_dtype = wqkv_ref.dtype             # bf16 on TPU, f32 on the interpret/CPU fallback

    # ---- weights / biases loaded ONCE (shared by all n_layers blocks).
    #      Biases/gammas/betas stay (1, .) — no (S, .) broadcast materialization.
    wqkv = wqkv_ref[...]                  # (H, 3H); wq columns pre-scaled by 1/sqrt(d)
    wo = wo_ref[...]                      # (H, H)
    w1 = w1_ref[...]                      # (H, FF)
    w2 = w2_ref[...]                      # (FF, H)
    bqkv = bqkv_ref[...]                  # (1, 3H) f32
    bo = bo_ref[...]                      # (1, H)
    fb1 = fb1_ref[...]                    # (1, FF)
    fb2 = fb2_ref[...]                    # (1, H)
    g1, b1 = g1_ref[...], b1_ref[...]
    g2, b2 = g2_ref[...], b2_ref[...]

    # additive mask bias (1, 1, S): 0 where attend, -1e9 where padded
    mask_bias = ((mask_ref[0] - 1.0) * 1e9)[None, :, :]

    # ---- Embeddings: tok_embed2 linear + pos + seg + layernorm ----
    emb = jnp.dot(e1_ref[0], tw2_ref[...], preferred_element_type=jnp.float32)
    emb = emb + tb2_ref[...] + pos_ref[...] + seg_ref[0]
    h0 = _layernorm(emb, ge_ref[...], be_ref[...])           # (S, H) f32

    def gelu(x):
        if approx_gelu:
            return jax.nn.gelu(x, approximate=True)          # tanh -> EUP slot
        return _gelu_exact(x)                                 # exact HF numerics

    # ---- FourierBlock, applied n_layers times with SHARED weights (as in the
    #      reference: the same self.block is reused in the layer loop) ----
    def layer(_, x):
        xb = x.astype(mm_dtype)

        # fused QKV projection: one (S,H)x(H,3H) MXU matmul, f32 acc, ONE downcast.
        qkv = (jnp.dot(xb, wqkv, preferred_element_type=jnp.float32) + bqkv).astype(mm_dtype)

        # split heads; k kept in (nh, d, S) layout (saves one batched transpose
        # and feeds the score matmul a non-transposed RHS).
        qkv_t = jnp.transpose(qkv).reshape(3 * nh, d, S)      # (3nh, d, S)
        q = jnp.transpose(qkv_t[:nh], (0, 2, 1))              # (nh, S, d), pre-scaled by 1/sqrt(d)
        k = qkv_t[nh:2 * nh]                                  # (nh, d, S)
        v = jnp.transpose(qkv_t[2 * nh:], (0, 2, 1))          # (nh, S, d)

        # TODO(synk): FourierAttention's class body is absent from models.py; implemented as
        # multi-head Gaussian density-kernel attention softmax_j(-||q_i-k_j||^2/(2*sqrt(d))).
        # The -||q_i||^2 term is constant per query row and cancels in the softmax, so it is
        # dropped; the 1/sqrt(d) scale is folded into wq/bq and -scale*||k||^2 + mask into a
        # single per-key row bias so the (nh,S,S) tensor needs only one elementwise add.
        kf = k.astype(jnp.float32)
        kn = jnp.sum(kf * kf, axis=1)                         # (nh, S) f32
        row_bias = mask_bias - scale * kn[:, None, :]         # (nh, 1, S)

        qk = jnp.einsum('hqd,hdk->hqk', q, k, preferred_element_type=jnp.float32)
        s = qk + row_bias
        s = s - jnp.max(s, axis=-1, keepdims=True)
        p = jnp.exp(s)
        p = p * pl.reciprocal(jnp.sum(p, axis=-1, keepdims=True), approx=True)
        ctx = jnp.einsum('hqk,hkd->hqd', p.astype(mm_dtype), v,
                         preferred_element_type=jnp.float32)  # (nh, S, d)

        # merge heads (nh, S, d) -> (S, H)
        ctx = jnp.transpose(jnp.transpose(ctx, (0, 2, 1)).reshape(H, S))

        # output projection (nn.Linear proj); nn.Dropout is identity at inference.
        proj = jnp.dot(ctx.astype(mm_dtype), wo, preferred_element_type=jnp.float32) + bo
        h1 = _layernorm(x + proj, g1, b1)

        # position-wise feed-forward
        ff = jnp.dot(h1.astype(mm_dtype), w1, preferred_element_type=jnp.float32) + fb1
        ff = gelu(ff)
        ff = jnp.dot(ff.astype(mm_dtype), w2, preferred_element_type=jnp.float32) + fb2
        return _layernorm(h1 + ff, g2, b2)

    # full unroll only for tiny layer counts — large unrolled bodies blow up
    # instruction footprint / vreg live ranges.
    out_ref[0] = lax.fori_loop(0, n_layers, layer, h0, unroll=(n_layers <= 2))


# ---------------- wrapper ----------------
def _full_spec(shape):
    nd = len(shape)
    return pl.BlockSpec(shape, lambda b, _nd=nd: (0,) * _nd)


def _vmem_limit_bytes():
    # Generation-aware VMEM budget: ~85% of physical VMEM (headroom for Mosaic
    # scratch), capped. Fallback when TPU info is unavailable (interpret mode).
    if jax.default_backend() == "tpu":
        try:
            cap = pltpu.get_tpu_info().vmem_capacity_bytes
            return min(int(cap * 0.85), 112 * 1024 * 1024)
        except Exception:
            pass
    return 64 * 1024 * 1024


def fourierformer_forward(tokens, seg, mask, params, n_heads, n_layers, approx_gelu=False):
    B, S = tokens.shape
    E = params["tok_embed1"].shape[1]
    H = params["pos_embed"].shape[1]
    FF = params["ff_w1"].shape[1]
    d = H // n_heads

    # bf16 MXU operands on real TPU; f32 elsewhere (CPU/interpret dots do not
    # support BF16 x BF16 = F32 — the failure in the previous run).
    mm_dtype = jnp.bfloat16 if jax.default_backend() == "tpu" else jnp.float32

    # glue in plain JAX: embedding-table gathers + one-time weight packing / casts
    e1 = params["tok_embed1"][tokens].astype(mm_dtype)                  # (B, S, E)
    seg_e = params["seg_embed"][seg]                                    # (B, S, H)
    pos_e = params["pos_embed"][:S]                                     # (S, H)
    tok_w2 = params["tok_w2"].astype(mm_dtype)

    # Fold the attention score scale 2*(0.5/sqrt(d)) = 1/sqrt(d) into wq/bq once
    # here, so the (nh,S,S) score tensor needs no scaling pass inside the kernel.
    q_scale = 1.0 / math.sqrt(d)
    wqkv = jnp.concatenate([params["wq"] * q_scale, params["wk"], params["wv"]],
                           axis=1).astype(mm_dtype)
    bqkv = jnp.concatenate([params["bq"] * q_scale, params["bk"], params["bv"]], axis=1)
    wo = params["wo"].astype(mm_dtype)
    ff_w1 = params["ff_w1"].astype(mm_dtype)
    ff_w2 = params["ff_w2"].astype(mm_dtype)

    operands = [e1, pos_e, seg_e, mask,
                tok_w2, params["tok_b2"], params["embed_gamma"], params["embed_beta"],
                wqkv, bqkv, wo, params["bo"],
                params["gamma1"], params["beta1"],
                ff_w1, params["ff_b1"], ff_w2, params["ff_b2"],
                params["gamma2"], params["beta2"]]

    in_specs = [
        pl.BlockSpec((1, S, E), lambda b: (b, 0, 0)),
        _full_spec((S, H)),
        pl.BlockSpec((1, S, H), lambda b: (b, 0, 0)),
        pl.BlockSpec((1, 1, S), lambda b: (b, 0, 0)),
    ] + [_full_spec(w.shape) for w in operands[4:]]
    # TODO(synk): for v7x at production shapes, single-buffer the constant-index
    # weight BlockSpecs (pipeline_mode=pl.Buffered(1)) and flash-tile the
    # (nh,S,S) scores over query blocks; unnecessary at these toy shapes.

    # advisory cost estimate for XLA scheduling of the fused custom call
    per_layer_flops = (2 * S * H * 3 * H     # qkv proj
                       + 4 * S * S * H       # scores + context
                       + 2 * S * H * H       # output proj
                       + 4 * S * H * FF)     # feed-forward
    flops = B * (2 * S * E * H + n_layers * per_layer_flops)
    transcendentals = B * n_layers * (n_heads * S * S + S * FF)   # exp + erf
    bytes_accessed = sum(int(o.size) * o.dtype.itemsize for o in operands) + B * S * H * 4

    return pl.pallas_call(
        functools.partial(fourier_former_kernel, n_heads, n_layers, approx_gelu),
        out_shape=jax.ShapeDtypeStruct((B, S, H), jnp.float32),
        grid=(B,),
        in_specs=in_specs,
        out_specs=pl.BlockSpec((1, S, H), lambda b: (b, 0, 0)),
        compiler_params=pltpu.CompilerParams(
            dimension_semantics=("parallel",),
            vmem_limit_bytes=_vmem_limit_bytes(),
        ),
        cost_estimate=pl.CostEstimate(flops=flops,
                                      transcendentals=transcendentals,
                                      bytes_accessed=bytes_accessed),
    )(*operands)


if __name__ == "__main__":
    # small config implied by the module: vocab/embedding/hidden/hidden_ff/max_len/n_segments
    B, S = 2, 8
    VOCAB, E, H, FF = 32, 16, 32, 64
    MAX_LEN, N_SEG, N_HEADS, N_LAYERS = 16, 2, 4, 2

    key = jax.random.PRNGKey(0)
    keys = jax.random.split(key, 12)
    nrm = lambda k, shp: 0.02 * jax.random.normal(k, shp, dtype=jnp.float32)
    ones = lambda shp: jnp.ones(shp, jnp.float32)
    zeros = lambda shp: jnp.zeros(shp, jnp.float32)

    params = dict(
        tok_embed1=nrm(keys[0], (VOCAB, E)),
        tok_w2=nrm(keys[1], (E, H)), tok_b2=zeros((1, H)),
        pos_embed=nrm(keys[2], (MAX_LEN, H)),
        seg_embed=nrm(keys[3], (N_SEG, H)),
        embed_gamma=ones((1, H)), embed_beta=zeros((1, H)),
        wq=nrm(keys[4], (H, H)), bq=zeros((1, H)),
        wk=nrm(keys[5], (H, H)), bk=zeros((1, H)),
        wv=nrm(keys[6], (H, H)), bv=zeros((1, H)),
        wo=nrm(keys[7], (H, H)), bo=zeros((1, H)),
        gamma1=ones((1, H)), beta1=zeros((1, H)),
        ff_w1=nrm(keys[8], (H, FF)), ff_b1=zeros((1, FF)),
        ff_w2=nrm(keys[9], (FF, H)), ff_b2=zeros((1, H)),
        gamma2=ones((1, H)), beta2=zeros((1, H)),
    )

    tokens = jax.random.randint(keys[10], (B, S), 0, VOCAB, dtype=jnp.int32)
    seg = jax.random.randint(keys[11], (B, S), 0, N_SEG, dtype=jnp.int32)
    # attention mask: 1 = attend, 0 = padded (last two keys of batch 1 masked)
    mask = jnp.ones((B, S), jnp.float32).at[1, -2:].set(0.0).reshape(B, 1, S)

    # embeddings + all N_LAYERS shared-weight blocks run in one fused pallas_call
    h = fourierformer_forward(tokens, seg, mask, params, N_HEADS, N_LAYERS)

    h = jax.block_until_ready(h)
    assert h.shape == (B, S, H)
    assert bool(jnp.all(jnp.isfinite(h)))
    print("KERNEL_OK")
</pallas_src>

<mosaic_0001>
module attributes {stable_mosaic.version = 11 : i64} {
  func.func @fourier_former_kernel(%arg0: i32, %arg1: memref<1x8x16xf32, #tpu.memory_space<vmem>>, %arg2: memref<8x32xf32, #tpu.memory_space<vmem>>, %arg3: memref<1x8x32xf32, #tpu.memory_space<vmem>>, %arg4: memref<1x1x8xf32, #tpu.memory_space<vmem>>, %arg5: memref<16x32xf32, #tpu.memory_space<vmem>>, %arg6: memref<1x32xf32, #tpu.memory_space<vmem>>, %arg7: memref<1x32xf32, #tpu.memory_space<vmem>>, %arg8: memref<1x32xf32, #tpu.memory_space<vmem>>, %arg9: memref<32x96xf32, #tpu.memory_space<vmem>>, %arg10: memref<1x96xf32, #tpu.memory_space<vmem>>, %arg11: memref<32x32xf32, #tpu.memory_space<vmem>>, %arg12: memref<1x32xf32, #tpu.memory_space<vmem>>, %arg13: memref<1x32xf32, #tpu.memory_space<vmem>>, %arg14: memref<1x32xf32, #tpu.memory_space<vmem>>, %arg15: memref<32x64xf32, #tpu.memory_space<vmem>>, %arg16: memref<1x64xf32, #tpu.memory_space<vmem>>, %arg17: memref<64x32xf32, #tpu.memory_space<vmem>>, %arg18: memref<1x32xf32, #tpu.memory_space<vmem>>, %arg19: memref<1x32xf32, #tpu.memory_space<vmem>>, %arg20: memref<1x32xf32, #tpu.memory_space<vmem>>, %arg21: memref<1x8x32xf32, #tpu.memory_space<vmem>>) attributes {dimension_semantics = [#tpu.dimension_semantics<parallel>], iteration_bounds = array<i64: 2>, scalar_prefetch = 0 : i64, scratch_operands = 0 : i64, tpu.core_type = #tpu.core_type<tc>, window_params = [{transform_indices = @transform_0, window_bounds = array<i64: 1, 8, 16>}, {pipeline_mode = #tpu.pipeline_mode<synchronous>, transform_indices = @transform_1, window_bounds = array<i64: 8, 32>}, {transform_indices = @transform_2, window_bounds = array<i64: 1, 8, 32>}, {transform_indices = @transform_3, window_bounds = array<i64: 1, 1, 8>}, {pipeline_mode = #tpu.pipeline_mode<synchronous>, transform_indices = @transform_4, window_bounds = array<i64: 16, 32>}, {pipeline_mode = #tpu.pipeline_mode<synchronous>, transform_indices = @transform_5, window_bounds = array<i64: 1, 32>}, {pipeline_mode = #tpu.pipeline_mode<synchronous>, transform_indices = @transform_6, window_bounds = array<i64: 1, 32>}, {pipeline_mode = #tpu.pipeline_mode<synchronous>, transform_indices = @transform_7, window_bounds = array<i64: 1, 32>}, {pipeline_mode = #tpu.pipeline_mode<synchronous>, transform_indices = @transform_8, window_bounds = array<i64: 32, 96>}, {pipeline_mode = #tpu.pipeline_mode<synchronous>, transform_indices = @transform_9, window_bounds = array<i64: 1, 96>}, {pipeline_mode = #tpu.pipeline_mode<synchronous>, transform_indices = @transform_10, window_bounds = array<i64: 32, 32>}, {pipeline_mode = #tpu.pipeline_mode<synchronous>, transform_indices = @transform_11, window_bounds = array<i64: 1, 32>}, {pipeline_mode = #tpu.pipeline_mode<synchronous>, transform_indices = @transform_12, window_bounds = array<i64: 1, 32>}, {pipeline_mode = #tpu.pipeline_mode<synchronous>, transform_indices = @transform_13, window_bounds = array<i64: 1, 32>}, {pipeline_mode = #tpu.pipeline_mode<synchronous>, transform_indices = @transform_14, window_bounds = array<i64: 32, 64>}, {pipeline_mode = #tpu.pipeline_mode<synchronous>, transform_indices = @transform_15, window_bounds = array<i64: 1, 64>}, {pipeline_mode = #tpu.pipeline_mode<synchronous>, transform_indices = @transform_16, window_bounds = array<i64: 64, 32>}, {pipeline_mode = #tpu.pipeline_mode<synchronous>, transform_indices = @transform_17, window_bounds = array<i64: 1, 32>}, {pipeline_mode = #tpu.pipeline_mode<synchronous>, transform_indices = @transform_18, window_bounds = array<i64: 1, 32>}, {pipeline_mode = #tpu.pipeline_mode<synchronous>, transform_indices = @transform_19, window_bounds = array<i64: 1, 32>}, {transform_indices = @transform_20, window_bounds = array<i64: 1, 8, 32>}]} {
    %c0 = arith.constant 0 : index
    %c0_0 = arith.constant 0 : index
    %0 = vector.load %arg9[%c0, %c0_0] : memref<32x96xf32, #tpu.memory_space<vmem>>, vector<32x96xf32>
    %c0_1 = arith.constant 0 : index
    %c0_2 = arith.constant 0 : index
    %1 = vector.load %arg11[%c0_1, %c0_2] : memref<32x32xf32, #tpu.memory_space<vmem>>, vector<32x32xf32>
    %c0_3 = arith.constant 0 : index
    %c0_4 = arith.constant 0 : index
    %2 = vector.load %arg15[%c0_3, %c0_4] : memref<32x64xf32, #tpu.memory_space<vmem>>, vector<32x64xf32>
    %c0_5 = arith.constant 0 : index
    %c0_6 = arith.constant 0 : index
    %3 = vector.load %arg17[%c0_5, %c0_6] : memref<64x32xf32, #tpu.memory_space<vmem>>, vector<64x32xf32>
    %c0_7 = arith.constant 0 : index
    %c0_8 = arith.constant 0 : index
    %4 = vector.load %arg10[%c0_7, %c0_8] : memref<1x96xf32, #tpu.memory_space<vmem>>, vector<1x96xf32>
    %c0_9 = arith.constant 0 : index
    %c0_10 = arith.constant 0 : index
    %5 = vector.load %arg12[%c0_9, %c0_10] : memref<1x32xf32, #tpu.memory_space<vmem>>, vector<1x32xf32>
    %c0_11 = arith.constant 0 : index
    %c0_12 = arith.constant 0 : index
    %6 = vector.load %arg16[%c0_11, %c0_12] : memref<1x64xf32, #tpu.memory_space<vmem>>, vector<1x64xf32>
    %c0_13 = arith.constant 0 : index
    %c0_14 = arith.constant 0 : index
    %7 = vector.load %arg18[%c0_13, %c0_14] : memref<1x32xf32, #tpu.memory_space<vmem>>, vector<1x32xf32>
    %c0_15 = arith.constant 0 : index
    %c0_16 = arith.constant 0 : index
    %8 = vector.load %arg13[%c0_15, %c0_16] : memref<1x32xf32, #tpu.memory_space<vmem>>, vector<1x32xf32>
    %c0_17 = arith.constant 0 : index
    %c0_18 = arith.constant 0 : index
    %9 = vector.load %arg14[%c0_17, %c0_18] : memref<1x32xf32, #tpu.memory_space<vmem>>, vector<1x32xf32>
    %c0_19 = arith.constant 0 : index
    %c0_20 = arith.constant 0 : index
    %10 = vector.load %arg19[%c0_19, %c0_20] : memref<1x32xf32, #tpu.memory_space<vmem>>, vector<1x32xf32>
    %c0_21 = arith.constant 0 : index
    %c0_22 = arith.constant 0 : index
    %11 = vector.load %arg20[%c0_21, %c0_22] : memref<1x32xf32, #tpu.memory_space<vmem>>, vector<1x32xf32>
    %c0_23 = arith.constant 0 : index
    %c0_24 = arith.constant 0 : index
    %c0_25 = arith.constant 0 : index
    %12 = vector.load %arg4[%c0_23, %c0_24, %c0_25] : memref<1x1x8xf32, #tpu.memory_space<vmem>>, vector<1x1x8xf32>
    %13 = vector.shape_cast %12 : vector<1x1x8xf32> to vector<1x8xf32>
    %cst = arith.constant 1.000000e+00 : f32
    %14 = vector.broadcast %cst : f32 to vector<1x8xf32>
    %15 = arith.subf %13, %14 : vector<1x8xf32>
    %cst_26 = arith.constant 1.000000e+09 : f32
    %16 = vector.broadcast %cst_26 : f32 to vector<1x8xf32>
    %17 = arith.mulf %15, %16 : vector<1x8xf32>
    %18 = vector.shape_cast %17 : vector<1x8xf32> to vector<1x1x8xf32>
    %c0_27 = arith.constant 0 : index
    %c0_28 = arith.constant 0 : index
    %c0_29 = arith.constant 0 : index
    %19 = vector.load %arg1[%c0_27, %c0_28, %c0_29] : memref<1x8x16xf32, #tpu.memory_space<vmem>>, vector<1x8x16xf32>
    %20 = vector.shape_cast %19 : vector<1x8x16xf32> to vector<8x16xf32>
    %c0_30 = arith.constant 0 : index
    %c0_31 = arith.constant 0 : index
    %21 = vector.load %arg5[%c0_30, %c0_31] : memref<16x32xf32, #tpu.memory_space<vmem>>, vector<16x32xf32>
    %cst_32 = arith.constant dense<0.000000e+00> : vector<8x32xf32>
    %22 = tpu.matmul %20, %21, %cst_32 {dimension_numbers = #tpu.dot_dimension_numbers<[1], [0], [0], [1], [0, 0, 1, 1], [], []>} : vector<8x16xf32>, vector<16x32xf32>, vector<8x32xf32> -> vector<8x32xf32>
    %c0_33 = arith.constant 0 : index
    %c0_34 = arith.constant 0 : index
    %23 = vector.load %arg6[%c0_33, %c0_34] : memref<1x32xf32, #tpu.memory_space<vmem>>, vector<1x32xf32>
    %24 = vector.broadcast %23 : vector<1x32xf32> to vector<8x32xf32>
    %25 = arith.addf %22, %24 : vector<8x32xf32>
    %c0_35 = arith.constant 0 : index
    %c0_36 = arith.constant 0 : index
    %26 = vector.load %arg2[%c0_35, %c0_36] : memref<8x32xf32, #tpu.memory_space<vmem>>, vector<8x32xf32>
    %27 = arith.addf %25, %26 : vector<8x32xf32>
    %c0_37 = arith.constant 0 : index
    %c0_38 = arith.constant 0 : index
    %c0_39 = arith.constant 0 : index
    %28 = vector.load %arg3[%c0_37, %c0_38, %c0_39] : memref<1x8x32xf32, #tpu.memory_space<vmem>>, vector<1x8x32xf32>
    %29 = vector.shape_cast %28 : vector<1x8x32xf32> to vector<8x32xf32>
    %30 = arith.addf %27, %29 : vector<8x32xf32>
    %c0_40 = arith.constant 0 : index
    %c0_41 = arith.constant 0 : index
    %31 = vector.load %arg7[%c0_40, %c0_41] : memref<1x32xf32, #tpu.memory_space<vmem>>, vector<1x32xf32>
    %c0_42 = arith.constant 0 : index
    %c0_43 = arith.constant 0 : index
    %32 = vector.load %arg8[%c0_42, %c0_43] : memref<1x32xf32, #tpu.memory_space<vmem>>, vector<1x32xf32>
    %cst_44 = arith.constant dense<0.000000e+00> : vector<8xf32>
    %33 = vector.multi_reduction <add>, %30, %cst_44 [1] : vector<8x32xf32> to vector<8xf32>
    %34 = vector.shape_cast %33 : vector<8xf32> to vector<8x1xf32>
    %cst_45 = arith.constant 3.200000e+01 : f32
    %35 = vector.broadcast %cst_45 : f32 to vector<8x1xf32>
    %36 = arith.divf %34, %35 : vector<8x1xf32>
    %37 = vector.broadcast %36 : vector<8x1xf32> to vector<8x32xf32>
    %38 = arith.subf %30, %37 : vector<8x32xf32>
    %39 = arith.mulf %38, %38 : vector<8x32xf32>
    %cst_46 = arith.constant dense<0.000000e+00> : vector<8xf32>
    %40 = vector.multi_reduction <add>, %39, %cst_46 [1] : vector<8x32xf32> to vector<8xf32>
    %41 = vector.shape_cast %40 : vector<8xf32> to vector<8x1xf32>
    %cst_47 = arith.constant 3.200000e+01 : f32
    %42 = vector.broadcast %cst_47 : f32 to vector<8x1xf32>
    %43 = arith.divf %41, %42 : vector<8x1xf32>
    %cst_48 = arith.constant 9.99999996E-13 : f32
    %44 = vector.broadcast %cst_48 : f32 to vector<8x1xf32>
    %45 = arith.addf %43, %44 : vector<8x1xf32>
    %46 = math.rsqrt %45 : vector<8x1xf32>
    %47 = vector.broadcast %46 : vector<8x1xf32> to vector<8x32xf32>
    %48 = arith.mulf %38, %47 : vector<8x32xf32>
    %49 = vector.broadcast %31 : vector<1x32xf32> to vector<8x32xf32>
    %50 = arith.mulf %49, %48 : vector<8x32xf32>
    %51 = vector.broadcast %32 : vector<1x32xf32> to vector<8x32xf32>
    %52 = arith.addf %50, %51 : vector<8x32xf32>
    %c0_i32 = arith.constant 0 : i32
    %cst_49 = arith.constant dense<0.000000e+00> : vector<8x96xf32>
    %53 = tpu.matmul %52, %0, %cst_49 {dimension_numbers = #tpu.dot_dimension_numbers<[1], [0], [0], [1], [0, 0, 1, 1], [], []>} : vector<8x32xf32>, vector<32x96xf32>, vector<8x96xf32> -> vector<8x96xf32>
    %54 = vector.broadcast %4 : vector<1x96xf32> to vector<8x96xf32>
    %55 = arith.addf %53, %54 : vector<8x96xf32>
    %56 = tpu.transpose %55, [1, 0] : vector<8x96xf32> -> vector<96x8xf32>
    %57 = vector.shape_cast %56 : vector<96x8xf32> to vector<12x8x8xf32>
    %58 = vector.extract_strided_slice %57 {offsets = [0, 0, 0], sizes = [4, 8, 8], strides = [1, 1, 1]} : vector<12x8x8xf32> to vector<4x8x8xf32>
    %59 = tpu.transpose %58, [0, 2, 1] : vector<4x8x8xf32> -> vector<4x8x8xf32>
    %60 = vector.extract_strided_slice %57 {offsets = [4, 0, 0], sizes = [4, 8, 8], strides = [1, 1, 1]} : vector<12x8x8xf32> to vector<4x8x8xf32>
    %61 = vector.extract_strided_slice %57 {offsets = [8, 0, 0], sizes = [4, 8, 8], strides = [1, 1, 1]} : vector<12x8x8xf32> to vector<4x8x8xf32>
    %62 = tpu.transpose %61, [0, 2, 1] : vector<4x8x8xf32> -> vector<4x8x8xf32>
    %63 = arith.mulf %60, %60 : vector<4x8x8xf32>
    %cst_50 = arith.constant dense<0.000000e+00> : vector<4x8xf32>
    %64 = vector.multi_reduction <add>, %63, %cst_50 [1] : vector<4x8x8xf32> to vector<4x8xf32>
    %65 = vector.shape_cast %64 : vector<4x8xf32> to vector<4x1x8xf32>
    %cst_51 = arith.constant 0.176776692 : f32
    %66 = vector.broadcast %cst_51 : f32 to vector<4x1x8xf32>
    %67 = arith.mulf %66, %65 : vector<4x1x8xf32>
    %68 = vector.broadcast %18 : vector<1x1x8xf32> to vector<4x1x8xf32>
    %69 = arith.subf %68, %67 : vector<4x1x8xf32>
    "tpu.trace_start"() <{level = 10 : i32, message = "hqd,hdk->hqk"}> : () -> ()
    %cst_52 = arith.constant dense<0.000000e+00> : vector<4x8x8xf32>
    %70 = tpu.matmul %59, %60, %cst_52 {dimension_numbers = #tpu.dot_dimension_numbers<[2], [1], [1], [2], [0, 0, 0, 1, 1, 2], [0], [0]>} : vector<4x8x8xf32>, vector<4x8x8xf32>, vector<4x8x8xf32> -> vector<4x8x8xf32>
    "tpu.trace_stop"() : () -> ()
    %71 = vector.broadcast %69 : vector<4x1x8xf32> to vector<4x8x8xf32>
    %72 = arith.addf %70, %71 : vector<4x8x8xf32>
    %cst_53 = arith.constant dense<0xFF800000> : vector<4x8xf32>
    %73 = vector.multi_reduction <maximumf>, %72, %cst_53 [2] : vector<4x8x8xf32> to vector<4x8xf32>
    %74 = vector.shape_cast %73 : vector<4x8xf32> to vector<4x8x1xf32>
    %75 = vector.broadcast %74 : vector<4x8x1xf32> to vector<4x8x8xf32>
    %76 = arith.subf %72, %75 : vector<4x8x8xf32>
    %77 = math.exp %76 : vector<4x8x8xf32>
    %cst_54 = arith.constant dense<0.000000e+00> : vector<4x8xf32>
    %78 = vector.multi_reduction <add>, %77, %cst_54 [2] : vector<4x8x8xf32> to vector<4x8xf32>
    %79 = vector.shape_cast %78 : vector<4x8xf32> to vector<4x8x1xf32>
    %80 = tpu.reciprocal %79 {approx = true} : vector<4x8x1xf32> -> vector<4x8x1xf32>
    %81 = vector.broadcast %80 : vector<4x8x1xf32> to vector<4x8x8xf32>
    %82 = arith.mulf %77, %81 : vector<4x8x8xf32>
    "tpu.trace_start"() <{level = 10 : i32, message = "hqk,hkd->hqd"}> : () -> ()
    %cst_55 = arith.constant dense<0.000000e+00> : vector<4x8x8xf32>
    %83 = tpu.matmul %82, %62, %cst_55 {dimension_numbers = #tpu.dot_dimension_numbers<[2], [1], [1], [2], [0, 0, 0, 1, 1, 2], [0], [0]>} : vector<4x8x8xf32>, vector<4x8x8xf32>, vector<4x8x8xf32> -> vector<4x8x8xf32>
    "tpu.trace_stop"() : () -> ()
    %84 = tpu.transpose %83, [0, 2, 1] : vector<4x8x8xf32> -> vector<4x8x8xf32>
    %85 = vector.shape_cast %84 : vector<4x8x8xf32> to vector<32x8xf32>
    %86 = tpu.transpose %85, [1, 0] : vector<32x8xf32> -> vector<8x32xf32>
    %cst_56 = arith.constant dense<0.000000e+00> : vector<8x32xf32>
    %87 = tpu.matmul %86, %1, %cst_56 {dimension_numbers = #tpu.dot_dimension_numbers<[1], [0], [0], [1], [0, 0, 1, 1], [], []>} : vector<8x32xf32>, vector<32x32xf32>, vector<8x32xf32> -> vector<8x32xf32>
    %88 = vector.broadcast %5 : vector<1x32xf32> to vector<8x32xf32>
    %89 = arith.addf %87, %88 : vector<8x32xf32>
    %90 = arith.addf %52, %89 : vector<8x32xf32>
    %cst_57 = arith.constant dense<0.000000e+00> : vector<8xf32>
    %91 = vector.multi_reduction <add>, %90, %cst_57 [1] : vector<8x32xf32> to vector<8xf32>
    %92 = vector.shape_cast %91 : vector<8xf32> to vector<8x1xf32>
    %cst_58 = arith.constant 3.200000e+01 : f32
    %93 = vector.broadcast %cst_58 : f32 to vector<8x1xf32>
    %94 = arith.divf %92, %93 : vector<8x1xf32>
    %95 = vector.broadcast %94 : vector<8x1xf32> to vector<8x32xf32>
    %96 = arith.subf %90, %95 : vector<8x32xf32>
    %97 = arith.mulf %96, %96 : vector<8x32xf32>
    %cst_59 = arith.constant dense<0.000000e+00> : vector<8xf32>
    %98 = vector.multi_reduction <add>, %97, %cst_59 [1] : vector<8x32xf32> to vector<8xf32>
    %99 = vector.shape_cast %98 : vector<8xf32> to vector<8x1xf32>
    %cst_60 = arith.constant 3.200000e+01 : f32
    %100 = vector.broadcast %cst_60 : f32 to vector<8x1xf32>
    %101 = arith.divf %99, %100 : vector<8x1xf32>
    %cst_61 = arith.constant 9.99999996E-13 : f32
    %102 = vector.broadcast %cst_61 : f32 to vector<8x1xf32>
    %103 = arith.addf %101, %102 : vector<8x1xf32>
    %104 = math.rsqrt %103 : vector<8x1xf32>
    %105 = vector.broadcast %104 : vector<8x1xf32> to vector<8x32xf32>
    %106 = arith.mulf %96, %105 : vector<8x32xf32>
    %107 = vector.broadcast %8 : vector<1x32xf32> to vector<8x32xf32>
    %108 = arith.mulf %107, %106 : vector<8x32xf32>
    %109 = vector.broadcast %9 : vector<1x32xf32> to vector<8x32xf32>
    %110 = arith.addf %108, %109 : vector<8x32xf32>
    %cst_62 = arith.constant dense<0.000000e+00> : vector<8x64xf32>
    %111 = tpu.matmul %110, %2, %cst_62 {dimension_numbers = #tpu.dot_dimension_numbers<[1], [0], [0], [1], [0, 0, 1, 1], [], []>} : vector<8x32xf32>, vector<32x64xf32>, vector<8x64xf32> -> vector<8x64xf32>
    %112 = vector.broadcast %6 : vector<1x64xf32> to vector<8x64xf32>
    %113 = arith.addf %111, %112 : vector<8x64xf32>
    %cst_63 = arith.constant 5.000000e-01 : f32
    %114 = vector.broadcast %cst_63 : f32 to vector<8x64xf32>
    %115 = arith.mulf %113, %114 : vector<8x64xf32>
    %cst_64 = arith.constant 1.41421354 : f32
    %116 = vector.broadcast %cst_64 : f32 to vector<8x64xf32>
    %117 = arith.divf %113, %116 : vector<8x64xf32>
    %118 = math.erf %117 : vector<8x64xf32>
    %cst_65 = arith.constant 1.000000e+00 : f32
    %119 = vector.broadcast %cst_65 : f32 to vector<8x64xf32>
    %120 = arith.addf %119, %118 : vector<8x64xf32>
    %121 = arith.mulf %115, %120 : vector<8x64xf32>
    %cst_66 = arith.constant dense<0.000000e+00> : vector<8x32xf32>
    %122 = tpu.matmul %121, %3, %cst_66 {dimension_numbers = #tpu.dot_dimension_numbers<[1], [0], [0], [1], [0, 0, 1, 1], [], []>} : vector<8x64xf32>, vector<64x32xf32>, vector<8x32xf32> -> vector<8x32xf32>
    %123 = vector.broadcast %7 : vector<1x32xf32> to vector<8x32xf32>
    %124 = arith.addf %122, %123 : vector<8x32xf32>
    %125 = arith.addf %110, %124 : vector<8x32xf32>
    %cst_67 = arith.constant dense<0.000000e+00> : vector<8xf32>
    %126 = vector.multi_reduction <add>, %125, %cst_67 [1] : vector<8x32xf32> to vector<8xf32>
    %127 = vector.shape_cast %126 : vector<8xf32> to vector<8x1xf32>
    %cst_68 = arith.constant 3.200000e+01 : f32
    %128 = vector.broadcast %cst_68 : f32 to vector<8x1xf32>
    %129 = arith.divf %127, %128 : vector<8x1xf32>
    %130 = vector.broadcast %129 : vector<8x1xf32> to vector<8x32xf32>
    %131 = arith.subf %125, %130 : vector<8x32xf32>
    %132 = arith.mulf %131, %131 : vector<8x32xf32>
    %cst_69 = arith.constant dense<0.000000e+00> : vector<8xf32>
    %133 = vector.multi_reduction <add>, %132, %cst_69 [1] : vector<8x32xf32> to vector<8xf32>
    %134 = vector.shape_cast %133 : vector<8xf32> to vector<8x1xf32>
    %cst_70 = arith.constant 3.200000e+01 : f32
    %135 = vector.broadcast %cst_70 : f32 to vector<8x1xf32>
    %136 = arith.divf %134, %135 : vector<8x1xf32>
    %cst_71 = arith.constant 9.99999996E-13 : f32
    %137 = vector.broadcast %cst_71 : f32 to vector<8x1xf32>
    %138 = arith.addf %136, %137 : vector<8x1xf32>
    %139 = math.rsqrt %138 : vector<8x1xf32>
    %140 = vector.broadcast %139 : vector<8x1xf32> to vector<8x32xf32>
    %141 = arith.mulf %131, %140 : vector<8x32xf32>
    %142 = vector.broadcast %10 : vector<1x32xf32> to vector<8x32xf32>
    %143 = arith.mulf %142, %141 : vector<8x32xf32>
    %144 = vector.broadcast %11 : vector<1x32xf32> to vector<8x32xf32>
    %145 = arith.addf %143, %144 : vector<8x32xf32>
    %c1_i32 = arith.constant 1 : i32
    %cst_72 = arith.constant dense<0.000000e+00> : vector<8x96xf32>
    %146 = tpu.matmul %145, %0, %cst_72 {dimension_numbers = #tpu.dot_dimension_numbers<[1], [0], [0], [1], [0, 0, 1, 1], [], []>} : vector<8x32xf32>, vector<32x96xf32>, vector<8x96xf32> -> vector<8x96xf32>
    %147 = vector.broadcast %4 : vector<1x96xf32> to vector<8x96xf32>
    %148 = arith.addf %146, %147 : vector<8x96xf32>
    %149 = tpu.transpose %148, [1, 0] : vector<8x96xf32> -> vector<96x8xf32>
    %150 = vector.shape_cast %149 : vector<96x8xf32> to vector<12x8x8xf32>
    %151 = vector.extract_strided_slice %150 {offsets = [0, 0, 0], sizes = [4, 8, 8], strides = [1, 1, 1]} : vector<12x8x8xf32> to vector<4x8x8xf32>
    %152 = tpu.transpose %151, [0, 2, 1] : vector<4x8x8xf32> -> vector<4x8x8xf32>
    %153 = vector.extract_strided_slice %150 {offsets = [4, 0, 0], sizes = [4, 8, 8], strides = [1, 1, 1]} : vector<12x8x8xf32> to vector<4x8x8xf32>
    %154 = vector.extract_strided_slice %150 {offsets = [8, 0, 0], sizes = [4, 8, 8], strides = [1, 1, 1]} : vector<12x8x8xf32> to vector<4x8x8xf32>
    %155 = tpu.transpose %154, [0, 2, 1] : vector<4x8x8xf32> -> vector<4x8x8xf32>
    %156 = arith.mulf %153, %153 : vector<4x8x8xf32>
    %cst_73 = arith.constant dense<0.000000e+00> : vector<4x8xf32>
    %157 = vector.multi_reduction <add>, %156, %cst_73 [1] : vector<4x8x8xf32> to vector<4x8xf32>
    %158 = vector.shape_cast %157 : vector<4x8xf32> to vector<4x1x8xf32>
    %cst_74 = arith.constant 0.176776692 : f32
    %159 = vector.broadcast %cst_74 : f32 to vector<4x1x8xf32>
    %160 = arith.mulf %159, %158 : vector<4x1x8xf32>
    %161 = vector.broadcast %18 : vector<1x1x8xf32> to vector<4x1x8xf32>
    %162 = arith.subf %161, %160 : vector<4x1x8xf32>
    "tpu.trace_start"() <{level = 10 : i32, message = "hqd,hdk->hqk"}> : () -> ()
    %cst_75 = arith.constant dense<0.000000e+00> : vector<4x8x8xf32>
    %163 = tpu.matmul %152, %153, %cst_75 {dimension_numbers = #tpu.dot_dimension_numbers<[2], [1], [1], [2], [0, 0, 0, 1, 1, 2], [0], [0]>} : vector<4x8x8xf32>, vector<4x8x8xf32>, vector<4x8x8xf32> -> vector<4x8x8xf32>
    "tpu.trace_stop"() : () -> ()
    %164 = vector.broadcast %162 : vector<4x1x8xf32> to vector<4x8x8xf32>
    %165 = arith.addf %163, %164 : vector<4x8x8xf32>
    %cst_76 = arith.constant dense<0xFF800000> : vector<4x8xf32>
    %166 = vector.multi_reduction <maximumf>, %165, %cst_76 [2] : vector<4x8x8xf32> to vector<4x8xf32>
    %167 = vector.shape_cast %166 : vector<4x8xf32> to vector<4x8x1xf32>
    %168 = vector.broadcast %167 : vector<4x8x1xf32> to vector<4x8x8xf32>
    %169 = arith.subf %165, %168 : vector<4x8x8xf32>
    %170 = math.exp %169 : vector<4x8x8xf32>
    %cst_77 = arith.constant dense<0.000000e+00> : vector<4x8xf32>
    %171 = vector.multi_reduction <add>, %170, %cst_77 [2] : vector<4x8x8xf32> to vector<4x8xf32>
    %172 = vector.shape_cast %171 : vector<4x8xf32> to vector<4x8x1xf32>
    %173 = tpu.reciprocal %172 {approx = true} : vector<4x8x1xf32> -> vector<4x8x1xf32>
    %174 = vector.broadcast %173 : vector<4x8x1xf32> to vector<4x8x8xf32>
    %175 = arith.mulf %170, %174 : vector<4x8x8xf32>
    "tpu.trace_start"() <{level = 10 : i32, message = "hqk,hkd->hqd"}> : () -> ()
    %cst_78 = arith.constant dense<0.000000e+00> : vector<4x8x8xf32>
    %176 = tpu.matmul %175, %155, %cst_78 {dimension_numbers = #tpu.dot_dimension_numbers<[2], [1], [1], [2], [0, 0, 0, 1, 1, 2], [0], [0]>} : vector<4x8x8xf32>, vector<4x8x8xf32>, vector<4x8x8xf32> -> vector<4x8x8xf32>
    "tpu.trace_stop"() : () -> ()
    %177 = tpu.transpose %176, [0, 2, 1] : vector<4x8x8xf32> -> vector<4x8x8xf32>
    %178 = vector.shape_cast %177 : vector<4x8x8xf32> to vector<32x8xf32>
    %179 = tpu.transpose %178, [1, 0] : vector<32x8xf32> -> vector<8x32xf32>
    %cst_79 = arith.constant dense<0.000000e+00> : vector<8x32xf32>
    %180 = tpu.matmul %179, %1, %cst_79 {dimension_numbers = #tpu.dot_dimension_numbers<[1], [0], [0], [1], [0, 0, 1, 1], [], []>} : vector<8x32xf32>, vector<32x32xf32>, vector<8x32xf32> -> vector<8x32xf32>
    %181 = vector.broadcast %5 : vector<1x32xf32> to vector<8x32xf32>
    %182 = arith.addf %180, %181 : vector<8x32xf32>
    %183 = arith.addf %145, %182 : vector<8x32xf32>
    %cst_80 = arith.constant dense<0.000000e+00> : vector<8xf32>
    %184 = vector.multi_reduction <add>, %183, %cst_80 [1] : vector<8x32xf32> to vector<8xf32>
    %185 = vector.shape_cast %184 : vector<8xf32> to vector<8x1xf32>
    %cst_81 = arith.constant 3.200000e+01 : f32
    %186 = vector.broadcast %cst_81 : f32 to vector<8x1xf32>
    %187 = arith.divf %185, %186 : vector<8x1xf32>
    %188 = vector.broadcast %187 : vector<8x1xf32> to vector<8x32xf32>
    %189 = arith.subf %183, %188 : vector<8x32xf32>
    %190 = arith.mulf %189, %189 : vector<8x32xf32>
    %cst_82 = arith.constant dense<0.000000e+00> : vector<8xf32>
    %191 = vector.multi_reduction <add>, %190, %cst_82 [1] : vector<8x32xf32> to vector<8xf32>
    %192 = vector.shape_cast %191 : vector<8xf32> to vector<8x1xf32>
    %cst_83 = arith.constant 3.200000e+01 : f32
    %193 = vector.broadcast %cst_83 : f32 to vector<8x1xf32>
    %194 = arith.divf %192, %193 : vector<8x1xf32>
    %cst_84 = arith.constant 9.99999996E-13 : f32
    %195 = vector.broadcast %cst_84 : f32 to vector<8x1xf32>
    %196 = arith.addf %194, %195 : vector<8x1xf32>
    %197 = math.rsqrt %196 : vector<8x1xf32>
    %198 = vector.broadcast %197 : vector<8x1xf32> to vector<8x32xf32>
    %199 = arith.mulf %189, %198 : vector<8x32xf32>
    %200 = vector.broadcast %8 : vector<1x32xf32> to vector<8x32xf32>
    %201 = arith.mulf %200, %199 : vector<8x32xf32>
    %202 = vector.broadcast %9 : vector<1x32xf32> to vector<8x32xf32>
    %203 = arith.addf %201, %202 : vector<8x32xf32>
    %cst_85 = arith.constant dense<0.000000e+00> : vector<8x64xf32>
    %204 = tpu.matmul %203, %2, %cst_85 {dimension_numbers = #tpu.dot_dimension_numbers<[1], [0], [0], [1], [0, 0, 1, 1], [], []>} : vector<8x32xf32>, vector<32x64xf32>, vector<8x64xf32> -> vector<8x64xf32>
    %205 = vector.broadcast %6 : vector<1x64xf32> to vector<8x64xf32>
    %206 = arith.addf %204, %205 : vector<8x64xf32>
    %cst_86 = arith.constant 5.000000e-01 : f32
    %207 = vector.broadcast %cst_86 : f32 to vector<8x64xf32>
    %208 = arith.mulf %206, %207 : vector<8x64xf32>
    %cst_87 = arith.constant 1.41421354 : f32
    %209 = vector.broadcast %cst_87 : f32 to vector<8x64xf32>
    %210 = arith.divf %206, %209 : vector<8x64xf32>
    %211 = math.erf %210 : vector<8x64xf32>
    %cst_88 = arith.constant 1.000000e+00 : f32
    %212 = vector.broadcast %cst_88 : f32 to vector<8x64xf32>
    %213 = arith.addf %212, %211 : vector<8x64xf32>
    %214 = arith.mulf %208, %213 : vector<8x64xf32>
    %cst_89 = arith.constant dense<0.000000e+00> : vector<8x32xf32>
    %215 = tpu.matmul %214, %3, %cst_89 {dimension_numbers = #tpu.dot_dimension_numbers<[1], [0], [0], [1], [0, 0, 1, 1], [], []>} : vector<8x64xf32>, vector<64x32xf32>, vector<8x32xf32> -> vector<8x32xf32>
    %216 = vector.broadcast %7 : vector<1x32xf32> to vector<8x32xf32>
    %217 = arith.addf %215, %216 : vector<8x32xf32>
    %218 = arith.addf %203, %217 : vector<8x32xf32>
    %cst_90 = arith.constant dense<0.000000e+00> : vector<8xf32>
    %219 = vector.multi_reduction <add>, %218, %cst_90 [1] : vector<8x32xf32> to vector<8xf32>
    %220 = vector.shape_cast %219 : vector<8xf32> to vector<8x1xf32>
    %cst_91 = arith.constant 3.200000e+01 : f32
    %221 = vector.broadcast %cst_91 : f32 to vector<8x1xf32>
    %222 = arith.divf %220, %221 : vector<8x1xf32>
    %223 = vector.broadcast %222 : vector<8x1xf32> to vector<8x32xf32>
    %224 = arith.subf %218, %223 : vector<8x32xf32>
    %225 = arith.mulf %224, %224 : vector<8x32xf32>
    %cst_92 = arith.constant dense<0.000000e+00> : vector<8xf32>
    %226 = vector.multi_reduction <add>, %225, %cst_92 [1] : vector<8x32xf32> to vector<8xf32>
    %227 = vector.shape_cast %226 : vector<8xf32> to vector<8x1xf32>
    %cst_93 = arith.constant 3.200000e+01 : f32
    %228 = vector.broadcast %cst_93 : f32 to vector<8x1xf32>
    %229 = arith.divf %227, %228 : vector<8x1xf32>
    %cst_94 = arith.constant 9.99999996E-13 : f32
    %230 = vector.broadcast %cst_94 : f32 to vector<8x1xf32>
    %231 = arith.addf %229, %230 : vector<8x1xf32>
    %232 = math.rsqrt %231 : vector<8x1xf32>
    %233 = vector.broadcast %232 : vector<8x1xf32> to vector<8x32xf32>
    %234 = arith.mulf %224, %233 : vector<8x32xf32>
    %235 = vector.broadcast %10 : vector<1x32xf32> to vector<8x32xf32>
    %236 = arith.mulf %235, %234 : vector<8x32xf32>
    %237 = vector.broadcast %11 : vector<1x32xf32> to vector<8x32xf32>
    %238 = arith.addf %236, %237 : vector<8x32xf32>
    %c0_95 = arith.constant 0 : index
    %c0_96 = arith.constant 0 : index
    %c0_97 = arith.constant 0 : index
    %239 = vector.load %arg21[%c0_95, %c0_96, %c0_97] : memref<1x8x32xf32, #tpu.memory_space<vmem>>, vector<1x8x32xf32>
    %240 = vector.shape_cast %239 : vector<1x8x32xf32> to vector<8x32xf32>
    %241 = vector.shape_cast %238 : vector<8x32xf32> to vector<1x8x32xf32>
    tpu.vector_store %arg21[%c0_95, %c0_96, %c0_97], %241 {strides = array<i32>} : memref<1x8x32xf32, #tpu.memory_space<vmem>>, vector<1x8x32xf32>,
    return
  }
  func.func @transform_0(%arg0: i32) -> (i32, i32, i32) {
    %c0_i32 = arith.constant 0 : i32
    %c0_i32_0 = arith.constant 0 : i32
    %c0_i32_1 = arith.constant 0 : i32
    return %arg0, %c0_i32, %c0_i32_0 : i32, i32, i32
  }
  func.func @transform_1(%arg0: i32) -> (i32, i32) {
    %c0_i32 = arith.constant 0 : i32
    %c0_i32_0 = arith.constant 0 : i32
    %c0_i32_1 = arith.constant 0 : i32
    return %c0_i32, %c0_i32_0 : i32, i32
  }
  func.func @transform_2(%arg0: i32) -> (i32, i32, i32) {
    %c0_i32 = arith.constant 0 : i32
    %c0_i32_0 = arith.constant 0 : i32
    %c0_i32_1 = arith.constant 0 : i32
    return %arg0, %c0_i32, %c0_i32_0 : i32, i32, i32
  }
  func.func @transform_3(%arg0: i32) -> (i32, i32, i32) {
    %c0_i32 = arith.constant 0 : i32
    %c0_i32_0 = arith.constant 0 : i32
    %c0_i32_1 = arith.constant 0 : i32
    return %arg0, %c0_i32, %c0_i32_0 : i32, i32, i32
  }
  func.func @transform_4(%arg0: i32) -> (i32, i32) {
    %c0_i32 = arith.constant 0 : i32
    %c0_i32_0 = arith.constant 0 : i32
    %c0_i32_1 = arith.constant 0 : i32
    return %c0_i32, %c0_i32_0 : i32, i32
  }
  func.func @transform_5(%arg0: i32) -> (i32, i32) {
    %c0_i32 = arith.constant 0 : i32
    %c0_i32_0 = arith.constant 0 : i32
    %c0_i32_1 = arith.constant 0 : i32
    return %c0_i32, %c0_i32_0 : i32, i32
  }
  func.func @transform_6(%arg0: i32) -> (i32, i32) {
    %c0_i32 = arith.constant 0 : i32
    %c0_i32_0 = arith.constant 0 : i32
    %c0_i32_1 = arith.constant 0 : i32
    return %c0_i32, %c0_i32_0 : i32, i32
  }
  func.func @transform_7(%arg0: i32) -> (i32, i32) {
    %c0_i32 = arith.constant 0 : i32
    %c0_i32_0 = arith.constant 0 : i32
    %c0_i32_1 = arith.constant 0 : i32
    return %c0_i32, %c0_i32_0 : i32, i32
  }
  func.func @transform_8(%arg0: i32) -> (i32, i32) {
    %c0_i32 = arith.constant 0 : i32
    %c0_i32_0 = arith.constant 0 : i32
    %c0_i32_1 = arith.constant 0 : i32
    return %c0_i32, %c0_i32_0 : i32, i32
  }
  func.func @transform_9(%arg0: i32) -> (i32, i32) {
    %c0_i32 = arith.constant 0 : i32
    %c0_i32_0 = arith.constant 0 : i32
    %c0_i32_1 = arith.constant 0 : i32
    return %c0_i32, %c0_i32_0 : i32, i32
  }
  func.func @transform_10(%arg0: i32) -> (i32, i32) {
    %c0_i32 = arith.constant 0 : i32
    %c0_i32_0 = arith.constant 0 : i32
    %c0_i32_1 = arith.constant 0 : i32
    return %c0_i32, %c0_i32_0 : i32, i32
  }
  func.func @transform_11(%arg0: i32) -> (i32, i32) {
    %c0_i32 = arith.constant 0 : i32
    %c0_i32_0 = arith.constant 0 : i32
    %c0_i32_1 = arith.constant 0 : i32
    return %c0_i32, %c0_i32_0 : i32, i32
  }
  func.func @transform_12(%arg0: i32) -> (i32, i32) {
    %c0_i32 = arith.constant 0 : i32
    %c0_i32_0 = arith.constant 0 : i32
    %c0_i32_1 = arith.constant 0 : i32
    return %c0_i32, %c0_i32_0 : i32, i32
  }
  func.func @transform_13(%arg0: i32) -> (i32, i32) {
    %c0_i32 = arith.constant 0 : i32
    %c0_i32_0 = arith.constant 0 : i32
    %c0_i32_1 = arith.constant 0 : i32
    return %c0_i32, %c0_i32_0 : i32, i32
  }
  func.func @transform_14(%arg0: i32) -> (i32, i32) {
    %c0_i32 = arith.constant 0 : i32
    %c0_i32_0 = arith.constant 0 : i32
    %c0_i32_1 = arith.constant 0 : i32
    return %c0_i32, %c0_i32_0 : i32, i32
  }
  func.func @transform_15(%arg0: i32) -> (i32, i32) {
    %c0_i32 = arith.constant 0 : i32
    %c0_i32_0 = arith.constant 0 : i32
    %c0_i32_1 = arith.constant 0 : i32
    return %c0_i32, %c0_i32_0 : i32, i32
  }
  func.func @transform_16(%arg0: i32) -> (i32, i32) {
    %c0_i32 = arith.constant 0 : i32
    %c0_i32_0 = arith.constant 0 : i32
    %c0_i32_1 = arith.constant 0 : i32
    return %c0_i32, %c0_i32_0 : i32, i32
  }
  func.func @transform_17(%arg0: i32) -> (i32, i32) {
    %c0_i32 = arith.constant 0 : i32
    %c0_i32_0 = arith.constant 0 : i32
    %c0_i32_1 = arith.constant 0 : i32
    return %c0_i32, %c0_i32_0 : i32, i32
  }
  func.func @transform_18(%arg0: i32) -> (i32, i32) {
    %c0_i32 = arith.constant 0 : i32
    %c0_i32_0 = arith.constant 0 : i32
    %c0_i32_1 = arith.constant 0 : i32
    return %c0_i32, %c0_i32_0 : i32, i32
  }
  func.func @transform_19(%arg0: i32) -> (i32, i32) {
    %c0_i32 = arith.constant 0 : i32
    %c0_i32_0 = arith.constant 0 : i32
    %c0_i32_1 = arith.constant 0 : i32
    return %c0_i32, %c0_i32_0 : i32, i32
  }
  func.func @transform_20(%arg0: i32) -> (i32, i32, i32) {
    %c0_i32 = arith.constant 0 : i32
    %c0_i32_0 = arith.constant 0 : i32
    %c0_i32_1 = arith.constant 0 : i32
    return %arg0, %c0_i32, %c0_i32_0 : i32, i32, i32
  }
}

</mosaic_0001>

<bundles_post_ra>
// kernel: tpu_custom_call.1
= control target key start
LH: loop header
LB: loop body
LE: loop exit
PB: predicated region body
PF: predicated region fallthrough
CT: control target
= control target key end

     0   :  { %s6557_s0 = inlined_call_operand.hbm [shape: f32[2,8,16], index: 0, kind: input, shape index: {}]   ;;  %s6558_s1 = inlined_call_operand.hbm [shape: f32[8,32], index: 1, kind: input, shape index: {}]   ;;  %s6559_s2 = inlined_call_operand.hbm [shape: f32[2,8,32], index: 2, kind: input, shape index: {}]   ;;  %s6560_s3 = inlined_call_operand.hbm [shape: f32[2,1,8], index: 3, kind: input, shape index: {}]   ;;  %s6561_s4 = inlined_call_operand.hbm [shape: f32[16,32], index: 4, kind: input, shape index: {}]   ;;  %s6562_s5 = inlined_call_operand.hbm [shape: f32[1,32], index: 5, kind: input, shape index: {}]   ;;  %s6563_s6 = inlined_call_operand.hbm [shape: f32[1,32], index: 6, kind: input, shape index: {}]   ;;  %s6564_s7 = inlined_call_operand.hbm [shape: f32[1,32], index: 7, kind: input, shape index: {}]   ;;  %s6565_s8 = inlined_call_operand.hbm [shape: f32[32,96], index: 8, kind: input, shape index: {}]   ;;  %s6566_s9 = inlined_call_operand.hbm [shape: f32[1,96], index: 9, kind: input, shape index: {}]   ;;  %s6567_s10 = inlined_call_operand.hbm [shape: f32[32,32], index: 10, kind: input, shape index: {}]   ;;  %s6568_s11 = inlined_call_operand.hbm [shape: f32[1,32], index: 11, kind: input, shape index: {}]   ;;  %s6569_s12 = inlined_call_operand.hbm [shape: f32[1,32], index: 12, kind: input, shape index: {}]   ;;  %s6570_s13 = inlined_call_operand.hbm [shape: f32[1,32], index: 13, kind: input, shape index: {}]   ;;  %s6571_s14 = inlined_call_operand.hbm [shape: f32[32,64], index: 14, kind: input, shape index: {}]   ;;  %s6572_s15 = inlined_call_operand.hbm [shape: f32[1,64], index: 15, kind: input, shape index: {}]   ;;  %s6573_s16 = inlined_call_operand.hbm [shape: f32[64,32], index: 16, kind: input, shape index: {}]   ;;  %s6574_s17 = inlined_call_operand.hbm [shape: f32[1,32], index: 17, kind: input, shape index: {}]   ;;  %s6575_s18 = inlined_call_operand.hbm [shape: f32[1,32], index: 18, kind: input, shape index: {}]   ;;  %s6576_s19 = inlined_call_operand.hbm [shape: f32[1,32], index: 19, kind: input, shape index: {}]   ;;  %s6577_s20 = inlined_call_operand.hbm [shape: f32[2,8,32], index: 20, kind: output, shape index: {}]  }
   0x1   :  { %6617 = sst [smem:[#allocation58_spill]] %s6557_s0 }
   0x2   :  { %6618 = sst [smem:[#allocation59_spill]] %s6558_s1 }
   0x3   :  { %6619 = sst [smem:[#allocation60_spill]] %s6559_s2 }
   0x4   :  { %6620 = sst [smem:[#allocation61_spill]] %s6560_s3 }
   0x5   :  { %6621 = sst [smem:[#allocation62_spill]] %s6561_s4 }
   0x6   :  { %6622 = sst [smem:[#allocation63_spill]] %s6562_s5 }
   0x7   :  { %6623 = sst [smem:[#allocation64_spill]] %s6563_s6 }
   0x8   :  { %6624 = sst [smem:[#allocation65_spill]] %s6564_s7 }
   0x9   :  { %6625 = sst [smem:[#allocation66_spill]] %s6566_s9 }
   0xa   :  { %6626 = sst [smem:[#allocation67_spill]] %s6571_s14 }
   0xb   :  { %6627 = sst [smem:[#allocation68_spill]] %s6573_s16 }
   0xc   :  { %6628 = sst [smem:[#allocation69_spill]] %s6575_s18 }
   0xd   :  { %6629 = sst [smem:[#allocation70_spill]] %s6576_s19 }
   0xe   :  { %6630 = sst [smem:[#allocation71_spill]] %s6577_s20 }
   0xf   :  { %25 = vsyncpa [#allocation3], 0 }
  0x10   :  { %27 = vsyncpa [#allocation3 + $0x1], 0 }
  0x11   :  { %28 = vsyncpa [#allocation6], 0 }
  0x12   :  { %29 = vsyncpa [#allocation11], 0 }
  0x13   :  { %30 = vsyncpa [#allocation14], 0 }
  0x14   :  { %31 = vsyncpa [#allocation17], 0 }
  0x15   :  { %32 = vsyncpa [#allocation20], 0 }
  0x16   :  { %33 = vsyncpa [#allocation23], 0 }
  0x17   :  { %34 = vsyncpa [#allocation26], 0 }
  0x18   :  { %35 = vsyncpa [#allocation29], 0 }
  0x19   :  { %36 = vsyncpa [#allocation32], 0 }
  0x1a   :  { %37 = vsyncpa [#allocation4], 0 }
  0x1b   :  { %39 = vsyncpa [#allocation4 + $0x1], 0  ;;  %s5643_s1 = smov 0   ;;  %s5645_s22 = smov 0  }
  0x1c   :  { %s5647_s23 = smov 0   ;;  %s5649_s24 = smov 0  }
  0x1d LB: > { %6631 = sst [smem:[#allocation47_spill]] %s5498_s1  ;;  %s5664_s2 = sadd.s32 4294967295, %s5510_s24   ;;  %s5510_s24 = sphi %s5649_s24, %s6710_s24   ;;  %s5506_s23 = sphi %s5647_s23, %s6713_s23   ;;  %s5502_s22 = sphi %s5645_s22, %s6712_s22   ;;  %s5498_s1 = sphi %s5643_s1, %s6711_s1  }
  0x1e   : > { %6632 = sst [smem:[#allocation48_spill]] %s5502_s22  ;;  %s4124_s25 = sadd.s32 4294967294, %s5510_s24  }
  0x1f   : > { %6633 = sst [smem:[#allocation49_spill]] %s5506_s23  ;;  %s5668_s3 = sadd.s32 1, %s5510_s24  }
  0x20   : > { %6634 = sst [smem:[#allocation50_spill]] %s5510_s24  ;;  %s52_s26 = sadd.s32 1, %s5506_s23 }
  0x21   : > { %6635 = sst [smem:[#allocation51_spill]] %s5664_s2  ;;  %s49_s27 = ssub.s32 %s5510_s24, %s5668_s3 }
  0x22   : > { %6636 = sst [smem:[#allocation52_spill]] %s5668_s3  ;;  %p59_p0 = scmp.ne.s32.totalorder %s5506_s23, %s5502_s22 }
  0x23   : > { %p50_p1 = scmp.eq.s32.totalorder %s49_s27, 0  ;;  %p60_p2 = scmp.eq.s32.totalorder %s5510_s24, 0 }
  0x24   : > { %p65_p3 = scmp.ne.s32.totalorder %s5502_s22, %s5498_s1  ;;  %p6583_p4 = scmp.eq.s32.totalorder %s5664_s2, 0 }
  0x25   : > { %s5680_s28 = scalar_select %p50_p1, %s5506_s23, %s52_s26  }
  0x26   : > { %p5682_p5 = por %p60_p2, %p59_p0  ;;  %p5688_p6 = por %p6583_p4, %p65_p3 }
  0x27   : > { %6637 = sst [smem:[#allocation53_spill]] %s5680_s28  ;;  %p498_p7 = scmp.eq.s32.totalorder %s5664_s2, 1 }
  0x28   : > { %s6639_s29 = scalar_select %p5688_p6, 1, 0 }
  0x29   : > { %p504_p8 = scmp.eq.s32.totalorder %s4124_s25, 1  ;;  %p4125_p9 = scmp.ge.s32.totalorder %s5510_s24, 1 }
  0x2a   : > { %6640 = sst [smem:[#allocation54_spill]] %s6639_s29  ;;  %p511_p10 = scmp.lt.s32.totalorder %s5510_s24, 3 }
  0x2b   : > { %p5695_p11 = por %p498_p7, %p59_p0  ;;  %p5699_p12 = por %p504_p8, %p65_p3 }
  0x2c   : > { %p5703_p13 = pnand %p4125_p9, %p511_p10  ;;  %p4715_p2 = scmp.lt.s32.totalorder %s5510_s24, 2 }
  0x2d   : > { %s6641_s30 = scalar_select %p5695_p11, 1, 0 }
  0x2e   : > { %s6643_s0 = scalar_select %p5699_p12, 1, 0 }
  0x2f   : > { %6642 = sst [smem:[#allocation55_spill]] %s6641_s30  ;;  %p4632_p4 = pneg %p5703_p13 }
  0x30   : > { %6644 = sst [smem:[#allocation56_spill]] %s6643_s0  ;;  %s721_s25 = sand.u32 1, %s5510_s24  }
  0x31   : > { %s6645_s21 = scalar_select %p5703_p13, 1, 0 }
  0x32   : > { %s6597_s26 = sand.u32 1, %s5506_s23   ;;  %p6647_p6 = scmp.eq.s32.totalorder %s5664_s2, 0 }
  0x33   : > { %6646 = sst [smem:[#allocation57_spill]] %s6645_s21  ;;  %s5721_s28 = sshll.u32 %s6597_s26, 3 }
  0x34   : > { %p5715_p0 = pnand %p4632_p4, %p6647_p6  ;;  %s4145_s3 = sshll.u32 %s5510_s24, 7 }
  0x35   : > { %s6649_s20 = sld [smem:[#allocation58_spill]]  ;;  %s725_s29 = scalar_lea.vmem [#allocation2], %s5721_s28 }
  0x36   : > { %s6648_s27 = scalar_select %p5715_p0, 1, 0 }
  0x37   : > { %s732_s22 = sshll.u32 %s725_s29, 4  ;;  %p5732_p3 = pnand %p4715_p2, %p5682_p5  ;;  %s5736_s22 = int_to_ptr.vmem [resolvable:$true] %s732_s22 }
  0x38   : > { %s6651_s23 = sld [smem:[#allocation60_spill]]  ;;  %s5743_s0 = scalar_lea.sflag [#allocation3], %s721_s25 }
  0x39   : > { %s6650_s2 = scalar_select %p5732_p3, 1, 0 }
  0x3a   : > { %p5749_p6 = pneg %p5732_p3 }
  0x3b   : > { %s5727_s30 = scalar_lea.hbm %s6649_s20, %s4145_s3  ;;  %s4839_s16 = scalar_lea.hbm %s6649_s20, 256 }
  0x3c   : > { %s4834_s24 = scalar_lea.hbm %s5727_s30, 128  ;;  %p4840_p8 = scmp.lt.u32.totalorder %s5727_s30, %s6649_s20 }
  0x3d   : > { %p4835_p4 = scmp.ne.s32.totalorder %s5727_s30, %s4834_s24  ;;  %p4841_p9 = scmp.lt.u32.totalorder %s4839_s16, %s4834_s24 }
  0x3e   : > { %s6652_s19 = smov %s6651_s23  ;;  %s5741_s1 = scalar_lea.hbm %s6651_s23, %s4145_s3 }
  0x3f   : > { %s6653_s29 = scalar_select %p5749_p6, 1, 0 }
  0x40   : > { %p4837_p5 = pnand %p5749_p6, %p4835_p4  ;;  %p4842_p10 = por %p4841_p9, %p4840_p8 }
  0x41   : > { %p4843_p2 = scmp.lt.u32.totalorder %s4834_s24, %s5727_s30 }
  0x42   : > { %p4838_p7 = pneg %p4837_p5 }
  0x43   : > { %p4844_p1 = por %p4843_p2, %p4842_p10 }
  0x45   : > { %p4845_p12 = pnand %p4844_p1, %p4838_p7 }
  0x47   : > { %4848 = shalt.err (!%p4845_p12)
}
  0x48   : > { %s4849_s3 = scalar_lea.vmem %s5736_s22, 128  ;;  %s5512_s18 = smov [#allocation2]  }
  0x49   : > { %p4850_p4 = scmp.ne.s32.totalorder %s5736_s22, %s4849_s3  ;;  %s4854_s25 = sshll.u32 %s5512_s18, 4  ;;  %s4855_s25 = int_to_ptr.vmem [resolvable:$false] %s4854_s25 }
  0x4a   : > { %s4856_s26 = scalar_lea.vmem %s4855_s25, 256  ;;  %p4857_p13 = scmp.lt.s32.totalorder %s5736_s22, %s4855_s25 }
  0x4b   : > { %p4852_p5 = pnand %p4850_p4, %p5749_p6  ;;  %p4858_p0 = scmp.lt.s32.totalorder %s4856_s26, %s4849_s3 }
  0x4d   : > { %p4853_p11 = pneg %p4852_p5  ;;  %p4859_p8 = por %p4858_p0, %p4857_p13 }
  0x4f   : > { %p4860_p9 = pnand %p4859_p8, %p4853_p11 }
  0x51   : > { %4863 = shalt.err (!%p4860_p9)
}
  0x52   : > { %4687 = dma.hbm_to_vmem [thread:$0]  (!%p5732_p3), %s5727_s30, 128, %s5736_s22, %s5743_s0  }
  0x53   : > { %s5513_s16 = smov [#allocation5]   ;;  %s5514_s4 = smov [#allocation10]  }
  0x54   : > { %s524_s24 = sshll.u32 %s5513_s16, 4  ;;  %s548_s21 = sshll.u32 %s5514_s4, 4  ;;  %s525_s24 = int_to_ptr.vmem [resolvable:$true] %s524_s24  ;;  %s5773_s21 = int_to_ptr.vmem [resolvable:$true] %s548_s21 }
  0x55   : > { %s6654_s3 = sld [smem:[#allocation59_spill]]  ;;  %p6655_p12 = scmp.ne.s32.totalorder %s6648_s27, 0 }
  0x57   : > { %p5783_p13 = pneg %p6655_p12 }
  0x5b   : > { %s4864_s25 = scalar_lea.hbm %s6654_s3, 128 }
  0x5c   : > { %p4865_p11 = scmp.ne.s32.totalorder %s6654_s3, %s4864_s25  ;;  %p4871_p7 = scmp.lt.u32.totalorder %s4864_s25, %s6654_s3 }
  0x5e   : > { %p4867_p1 = pnand %p5783_p13, %p4865_p11 }
  0x60   : > { %p4868_p0 = pneg %p4867_p1 }
  0x62   : > { %p4873_p10 = pnand %p4871_p7, %p4868_p0 }
  0x64   : > { %4876 = shalt.err (!%p4873_p10)
}
  0x65   : > { %s4877_s16 = scalar_lea.vmem %s525_s24, 128  ;;  %p4885_p8 = scmp.lt.s32.totalorder %s525_s24, %s525_s24 }
  0x66   : > { %p4878_p2 = scmp.ne.s32.totalorder %s525_s24, %s4877_s16  ;;  %p4886_p9 = scmp.lt.s32.totalorder %s4877_s16, %s4877_s16 }
  0x68   : > { %p4880_p4 = pnand %p4878_p2, %p5783_p13  ;;  %p4887_p3 = por %p4886_p9, %p4885_p8 }
  0x6a   : > { %p4881_p5 = pneg %p4880_p4 }
  0x6c   : > { %p4888_p6 = pnand %p4887_p3, %p4881_p5 }
  0x6e   : > { %4891 = shalt.err (!%p4888_p6)
}
  0x6f   : > { %4635 = dma.hbm_to_vmem [thread:$0]  (!%p6655_p12), %s6654_s3, 128, %s525_s24, [#allocation6]  }
  0x70   : > { %s6657_s5 = sld [smem:[#allocation63_spill]] }
  0x76   : > { %s4892_s25 = scalar_lea.hbm %s6657_s5, 16 }
  0x77   : > { %p4893_p11 = scmp.ne.s32.totalorder %s6657_s5, %s4892_s25  ;;  %p4899_p3 = scmp.lt.u32.totalorder %s4892_s25, %s6657_s5 }
  0x79   : > { %p4895_p1 = pnand %p4893_p11, %p5783_p13 }
  0x7b   : > { %p4896_p0 = pneg %p4895_p1 }
  0x7d   : > { %p4901_p6 = pnand %p4899_p3, %p4896_p0 }
  0x7f   : > { %4904 = shalt.err (!%p4901_p6)
}
  0x80   : > { %s4905_s24 = scalar_lea.vmem %s5773_s21, 16  ;;  %s4912_s20 = scalar_lea.vmem %s5773_s21, 32 }
  0x81   : > { %p4906_p7 = scmp.ne.s32.totalorder %s5773_s21, %s4905_s24  ;;  %p4913_p4 = scmp.lt.s32.totalorder %s5773_s21, %s5773_s21 }
  0x82   : > { %p4914_p5 = scmp.lt.s32.totalorder %s4912_s20, %s4905_s24 }
  0x83   : > { %p4908_p10 = pnand %p4906_p7, %p5783_p13 }
  0x84   : > { %p4915_p8 = por %p4914_p5, %p4913_p4 }
  0x85   : > { %p4909_p2 = pneg %p4908_p10 }
  0x87   : > { %p4916_p9 = pnand %p4915_p8, %p4909_p2 }
  0x89   : > { %4919 = shalt.err (!%p4916_p9)
}
  0x8a   : > { %4641 = dma.hbm_to_vmem [thread:$0]  (!%p6655_p12), %s6657_s5, 16, %s5773_s21, [#allocation11]  }
  0x8b   : > { %s5515_s18 = smov [#allocation13]   ;;  %s5516_s26 = smov [#allocation16]  }
  0x8c   : > { %s570_s25 = sshll.u32 %s5515_s18, 4  ;;  %s594_s22 = sshll.u32 %s5516_s26, 4  ;;  %s571_s25 = int_to_ptr.vmem [resolvable:$true] %s570_s25  ;;  %s5823_s22 = int_to_ptr.vmem [resolvable:$true] %s594_s22 }
  0x8d   : > { %s6658_s7 = sld [smem:[#allocation65_spill]] }
  0x93   : > { %s4920_s24 = scalar_lea.hbm %s6658_s7, 16 }
  0x94   : > { %p4921_p11 = scmp.ne.s32.totalorder %s6658_s7, %s4920_s24  ;;  %p4927_p3 = scmp.lt.u32.totalorder %s4920_s24, %s6658_s7 }
  0x96   : > { %p4923_p1 = pnand %p4921_p11, %p5783_p13 }
  0x98   : > { %p4924_p0 = pneg %p4923_p1 }
  0x9a   : > { %p4929_p6 = pnand %p4927_p3, %p4924_p0 }
  0x9c   : > { %4932 = shalt.err (!%p4929_p6)
}
  0x9d   : > { %s4933_s23 = scalar_lea.vmem %s571_s25, 16  ;;  %s4940_s18 = scalar_lea.vmem %s571_s25, 32 }
  0x9e   : > { %p4934_p7 = scmp.ne.s32.totalorder %s571_s25, %s4933_s23  ;;  %p4941_p4 = scmp.lt.s32.totalorder %s571_s25, %s571_s25 }
  0x9f   : > { %p4942_p5 = scmp.lt.s32.totalorder %s4940_s18, %s4933_s23 }
  0xa0   : > { %p4936_p10 = pnand %p4934_p7, %p5783_p13 }
  0xa1   : > { %p4943_p8 = por %p4942_p5, %p4941_p4 }
  0xa2   : > { %p4937_p2 = pneg %p4936_p10 }
  0xa4   : > { %p4944_p9 = pnand %p4943_p8, %p4937_p2 }
  0xa6   : > { %4947 = shalt.err (!%p4944_p9)
}
  0xa7   : > { %4647 = dma.hbm_to_vmem [thread:$0]  (!%p6655_p12), %s6658_s7, 16, %s571_s25, [#allocation14]  }
  0xa8   : > { %s6659_s9 = sld [smem:[#allocation66_spill]] }
  0xae   : > { %s4948_s24 = scalar_lea.hbm %s6659_s9, 16 }
  0xaf   : > { %p4949_p11 = scmp.ne.s32.totalorder %s6659_s9, %s4948_s24  ;;  %p4955_p3 = scmp.lt.u32.totalorder %s4948_s24, %s6659_s9 }
  0xb1   : > { %p4951_p1 = pnand %p4949_p11, %p5783_p13 }
  0xb3   : > { %p4952_p0 = pneg %p4951_p1 }
  0xb5   : > { %p4957_p6 = pnand %p4955_p3, %p4952_p0 }
  0xb7   : > { %4960 = shalt.err (!%p4957_p6)
}
  0xb8   : > { %s4961_s25 = scalar_lea.vmem %s5823_s22, 16  ;;  %s4968_s18 = scalar_lea.vmem %s5823_s22, 32 }
  0xb9   : > { %p4962_p7 = scmp.ne.s32.totalorder %s5823_s22, %s4961_s25  ;;  %p4969_p4 = scmp.lt.s32.totalorder %s5823_s22, %s5823_s22 }
  0xba   : > { %p4970_p5 = scmp.lt.s32.totalorder %s4968_s18, %s4961_s25 }
  0xbb   : > { %p4964_p10 = pnand %p4962_p7, %p5783_p13 }
  0xbc   : > { %p4971_p8 = por %p4970_p5, %p4969_p4 }
  0xbd   : > { %p4965_p2 = pneg %p4964_p10 }
  0xbf   : > { %p4972_p9 = pnand %p4971_p8, %p4965_p2 }
  0xc1   : > { %4975 = shalt.err (!%p4972_p9)
}
  0xc2   : > { %4653 = dma.hbm_to_vmem [thread:$0]  (!%p6655_p12), %s6659_s9, 16, %s5823_s22, [#allocation17]  }
  0xc3   : > { %s5517_s30 = smov [#allocation19]   ;;  %s5518_s24 = smov [#allocation22]  }
  0xc4   : > { %s618_s16 = sshll.u32 %s5517_s30, 4  ;;  %s640_s20 = sshll.u32 %s5518_s24, 4  ;;  %s619_s16 = int_to_ptr.vmem [resolvable:$true] %s618_s16  ;;  %s5867_s20 = int_to_ptr.vmem [resolvable:$true] %s640_s20 }
  0xc5   : > { %s4976_s23 = scalar_lea.hbm %s6568_s11, 16 }
  0xc6   : > { %p4977_p11 = scmp.ne.s32.totalorder %s6568_s11, %s4976_s23  ;;  %p4983_p3 = scmp.lt.u32.totalorder %s4976_s23, %s6568_s11 }
  0xc8   : > { %p4979_p1 = pnand %p4977_p11, %p5783_p13 }
  0xca   : > { %p4980_p0 = pneg %p4979_p1 }
  0xcc   : > { %p4985_p6 = pnand %p4983_p3, %p4980_p0 }
  0xce   : > { %4988 = shalt.err (!%p4985_p6)
}
  0xcf   : > { %s4989_s26 = scalar_lea.vmem %s619_s16, 16  ;;  %s4996_s30 = scalar_lea.vmem %s619_s16, 32 }
  0xd0   : > { %p4990_p7 = scmp.ne.s32.totalorder %s619_s16, %s4989_s26  ;;  %p4997_p4 = scmp.lt.s32.totalorder %s619_s16, %s619_s16 }
  0xd1   : > { %p4998_p5 = scmp.lt.s32.totalorder %s4996_s30, %s4989_s26 }
  0xd2   : > { %p4992_p10 = pnand %p4990_p7, %p5783_p13 }
  0xd3   : > { %p4999_p8 = por %p4998_p5, %p4997_p4 }
  0xd4   : > { %p4993_p2 = pneg %p4992_p10 }
  0xd6   : > { %p5000_p9 = pnand %p4999_p8, %p4993_p2 }
  0xd8   : > { %5003 = shalt.err (!%p5000_p9)
}
  0xd9   : > { %4659 = dma.hbm_to_vmem [thread:$0]  (!%p6655_p12), %s6568_s11, 16, %s619_s16, [#allocation20]  }
  0xda   : > { %s5004_s25 = scalar_lea.hbm %s6570_s13, 16 }
  0xdb   : > { %p5005_p11 = scmp.ne.s32.totalorder %s6570_s13, %s5004_s25  ;;  %p5011_p3 = scmp.lt.u32.totalorder %s5004_s25, %s6570_s13 }
  0xdd   : > { %p5007_p1 = pnand %p5005_p11, %p5783_p13 }
  0xdf   : > { %p5008_p0 = pneg %p5007_p1 }
  0xe1   : > { %p5013_p6 = pnand %p5011_p3, %p5008_p0 }
  0xe3   : > { %5016 = shalt.err (!%p5013_p6)
}
  0xe4   : > { %s5017_s16 = scalar_lea.vmem %s5867_s20, 16  ;;  %s5024_s30 = scalar_lea.vmem %s5867_s20, 32 }
  0xe5   : > { %p5018_p7 = scmp.ne.s32.totalorder %s5867_s20, %s5017_s16  ;;  %p5025_p4 = scmp.lt.s32.totalorder %s5867_s20, %s5867_s20 }
  0xe6   : > { %p5026_p5 = scmp.lt.s32.totalorder %s5024_s30, %s5017_s16 }
  0xe7   : > { %p5020_p10 = pnand %p5018_p7, %p5783_p13 }
  0xe8   : > { %p5027_p8 = por %p5026_p5, %p5025_p4 }
  0xe9   : > { %p5021_p2 = pneg %p5020_p10 }
  0xeb   : > { %p5028_p9 = pnand %p5027_p8, %p5021_p2 }
  0xed   : > { %5031 = shalt.err (!%p5028_p9)
}
  0xee   : > { %4665 = dma.hbm_to_vmem [thread:$0]  (!%p6655_p12), %s6570_s13, 16, %s5867_s20, [#allocation23]  }
  0xef   : > { %s5519_s21 = smov [#allocation25]   ;;  %s5520_s25 = smov [#allocation28]  }
  0xf0   : > { %s664_s23 = sshll.u32 %s5519_s21, 4  ;;  %s688_s18 = sshll.u32 %s5520_s25, 4  ;;  %s665_s23 = int_to_ptr.vmem [resolvable:$true] %s664_s23  ;;  %s5911_s18 = int_to_ptr.vmem [resolvable:$true] %s688_s18 }
  0xf1   : > { %s5032_s26 = scalar_lea.hbm %s6572_s15, 16 }
  0xf2   : > { %p5033_p11 = scmp.ne.s32.totalorder %s6572_s15, %s5032_s26  ;;  %p5039_p3 = scmp.lt.u32.totalorder %s5032_s26, %s6572_s15 }
  0xf4   : > { %p5035_p1 = pnand %p5033_p11, %p5783_p13 }
  0xf6   : > { %p5036_p0 = pneg %p5035_p1 }
  0xf8   : > { %p5041_p6 = pnand %p5039_p3, %p5036_p0 }
  0xfa   : > { %5044 = shalt.err (!%p5041_p6)
}
  0xfb   : > { %s5045_s4 = scalar_lea.vmem %s665_s23, 16  ;;  %s5052_s21 = scalar_lea.vmem %s665_s23, 32 }
  0xfc   : > { %p5046_p7 = scmp.ne.s32.totalorder %s665_s23, %s5045_s4  ;;  %p5053_p4 = scmp.lt.s32.totalorder %s665_s23, %s665_s23 }
  0xfd   : > { %p5054_p5 = scmp.lt.s32.totalorder %s5052_s21, %s5045_s4 }
  0xfe   : > { %p5048_p10 = pnand %p5046_p7, %p5783_p13 }
  0xff   : > { %p5055_p8 = por %p5054_p5, %p5053_p4 }
 0x100   : > { %p5049_p2 = pneg %p5048_p10 }
 0x102   : > { %p5056_p9 = pnand %p5055_p8, %p5049_p2 }
 0x104   : > { %5059 = shalt.err (!%p5056_p9)
}
 0x105   : > { %4671 = dma.hbm_to_vmem [thread:$0]  (!%p6655_p12), %s6572_s15, 16, %s665_s23, [#allocation26]  }
 0x106   : > { %s5060_s16 = scalar_lea.hbm %s6574_s17, 16 }
 0x107   : > { %p5061_p11 = scmp.ne.s32.totalorder %s6574_s17, %s5060_s16  ;;  %p5067_p3 = scmp.lt.u32.totalorder %s5060_s16, %s6574_s17 }
 0x109   : > { %p5063_p1 = pnand %p5061_p11, %p5783_p13 }
 0x10b   : > { %p5064_p0 = pneg %p5063_p1 }
 0x10d   : > { %p5069_p6 = pnand %p5067_p3, %p5064_p0 }
 0x10f   : > { %5072 = shalt.err (!%p5069_p6)
}
 0x110   : > { %s5073_s23 = scalar_lea.vmem %s5911_s18, 16  ;;  %s5080_s21 = scalar_lea.vmem %s5911_s18, 32 }
 0x111   : > { %p5074_p7 = scmp.ne.s32.totalorder %s5911_s18, %s5073_s23  ;;  %p5081_p4 = scmp.lt.s32.totalorder %s5911_s18, %s5911_s18 }
 0x112   : > { %p5082_p5 = scmp.lt.s32.totalorder %s5080_s21, %s5073_s23 }
 0x113   : > { %p5076_p10 = pnand %p5074_p7, %p5783_p13 }
 0x114   : > { %p5083_p8 = por %p5082_p5, %p5081_p4 }
 0x115   : > { %p5077_p2 = pneg %p5076_p10 }
 0x117   : > { %p5084_p9 = pnand %p5083_p8, %p5077_p2 }
 0x119   : > { %5087 = shalt.err (!%p5084_p9)
}
 0x11a   : > { %4677 = dma.hbm_to_vmem [thread:$0]  (!%p6655_p12), %s6574_s17, 16, %s5911_s18, [#allocation29]  }
 0x11b   : > { %s743_s22 = scalar_lea.vmem [#allocation7], %s5721_s28  ;;  %s5521_s16 = smov [#allocation9]  }
 0x11c   : > { %s750_s26 = sshll.u32 %s743_s22, 4  ;;  %s534_s30 = sshll.u32 %s5521_s16, 4  ;;  %s5956_s26 = int_to_ptr.vmem [resolvable:$true] %s750_s26  ;;  %s535_s30 = int_to_ptr.vmem [resolvable:$true] %s534_s30 }
 0x11d   : > { %s5088_s24 = scalar_lea.hbm %s5741_s1, 128  ;;  %p6660_p1 = scmp.ne.s32.totalorder %s6653_s29, 0 }
 0x11e   : > { %p5089_p11 = scmp.ne.s32.totalorder %s5741_s1, %s5088_s24  ;;  %s5093_s23 = scalar_lea.hbm %s6652_s19, 256 }
 0x11f   : > { %p5094_p6 = scmp.lt.u32.totalorder %s5741_s1, %s6652_s19  ;;  %p5095_p7 = scmp.lt.u32.totalorder %s5093_s23, %s5088_s24 }
 0x120   : > { %p5091_p0 = pnand %p5089_p11, %p6660_p1  ;;  %p5097_p2 = scmp.lt.u32.totalorder %s5088_s24, %s5741_s1 }
 0x121   : > { %p5096_p10 = por %p5095_p7, %p5094_p6 }
 0x122   : > { %p5092_p3 = pneg %p5091_p0 }
 0x123   : > { %p5098_p4 = por %p5097_p2, %p5096_p10 }
 0x125   : > { %p5099_p5 = pnand %p5098_p4, %p5092_p3 }
 0x127   : > { %5102 = shalt.err (!%p5099_p5)
}
 0x128   : > { %s5103_s28 = scalar_lea.vmem %s5956_s26, 128  ;;  %s5522_s18 = smov [#allocation7]  }
 0x129   : > { %p5104_p8 = scmp.ne.s32.totalorder %s5956_s26, %s5103_s28  ;;  %s5108_s3 = sshll.u32 %s5522_s18, 4  ;;  %s5109_s3 = int_to_ptr.vmem [resolvable:$false] %s5108_s3 }
 0x12a   : > { %s5110_s22 = scalar_lea.vmem %s5109_s3, 256  ;;  %p5111_p0 = scmp.lt.s32.totalorder %s5956_s26, %s5109_s3 }
 0x12b   : > { %p5106_p9 = pnand %p5104_p8, %p6660_p1  ;;  %p5112_p12 = scmp.lt.s32.totalorder %s5110_s22, %s5103_s28 }
 0x12d   : > { %p5107_p11 = pneg %p5106_p9  ;;  %p5113_p6 = por %p5112_p12, %p5111_p0 }
 0x12f   : > { %p5114_p7 = pnand %p5113_p6, %p5107_p11 }
 0x131   : > { %5117 = shalt.err (!%p5114_p7)
}
 0x132   : > { %p6661_p3 = scmp.ne.s32.totalorder %s6650_s2, 0  ;;  %s6662_s20 = sld [smem:[#allocation62_spill]] }
 0x134   : > { %4690 = dma.hbm_to_vmem [thread:$0]  (!%p6661_p3), %s5741_s1, 128, %s5956_s26, %s5743_s0  }
 0x138   : > { %s5118_s4 = scalar_lea.hbm %s6662_s20, 256 }
 0x139   : > { %p5119_p10 = scmp.ne.s32.totalorder %s6662_s20, %s5118_s4  ;;  %p5125_p4 = scmp.lt.u32.totalorder %s5118_s4, %s6662_s20 }
 0x13b   : > { %p5121_p12 = pnand %p5119_p10, %p5783_p13 }
 0x13d   : > { %p5122_p2 = pneg %p5121_p12 }
 0x13f   : > { %p5127_p5 = pnand %p5125_p4, %p5122_p2 }
 0x141   : > { %5130 = shalt.err (!%p5127_p5)
}
 0x142   : > { %s5131_s18 = scalar_lea.vmem %s535_s30, 256  ;;  %p5139_p0 = scmp.lt.s32.totalorder %s535_s30, %s535_s30 }
 0x143   : > { %p5132_p8 = scmp.ne.s32.totalorder %s535_s30, %s5131_s18  ;;  %p5140_p6 = scmp.lt.s32.totalorder %s5131_s18, %s5131_s18 }
 0x145   : > { %p5134_p9 = pnand %p5132_p8, %p5783_p13  ;;  %p5141_p7 = por %p5140_p6, %p5139_p0 }
 0x147   : > { %p5135_p11 = pneg %p5134_p9 }
 0x149   : > { %p5142_p3 = pnand %p5141_p7, %p5135_p11 }
 0x14b   : > { %5145 = shalt.err (!%p5142_p3)
}
 0x14c   : > { %s5523_s1 = smov 128   ;;  %s5524_s26 = smov 8  }
 0x14d   : > { %p6663_p10 = scmp.ne.s32.totalorder %s6648_s27, 0  ;;  %s5525_s16 = smov [#allocation12]  }
 0x14e   : > { %s559_s24 = sshll.u32 %s5525_s16, 4  ;;  %s5526_s4 = smov [#allocation15]   ;;  %s560_s24 = int_to_ptr.vmem [resolvable:$true] %s559_s24 }
 0x14f   : > { %4638 = dma.hbm_to_vmem [thread:$0]  (!%p6663_p10), %s6662_s20, 256, %s535_s30, [#allocation6], %s5523_s1, %s5523_s1, %s5524_s26  }
 0x150   : > { %s580_s23 = sshll.u32 %s5526_s4, 4  ;;  %s6664_s6 = sld [smem:[#allocation64_spill]]  ;;  %s581_s23 = int_to_ptr.vmem [resolvable:$true] %s580_s23 }
 0x156   : > { %s5146_s28 = scalar_lea.hbm %s6664_s6, 16 }
 0x157   : > { %p5147_p3 = scmp.ne.s32.totalorder %s6664_s6, %s5146_s28  ;;  %p5153_p4 = scmp.lt.u32.totalorder %s5146_s28, %s6664_s6 }
 0x159   : > { %p5149_p12 = pnand %p5147_p3, %p5783_p13 }
 0x15b   : > { %p5150_p2 = pneg %p5149_p12 }
 0x15d   : > { %p5155_p5 = pnand %p5153_p4, %p5150_p2 }
 0x15f   : > { %5158 = shalt.err (!%p5155_p5)
}
 0x160   : > { %s5159_s30 = scalar_lea.vmem %s560_s24, 16  ;;  %s5166_s3 = scalar_lea.vmem %s560_s24, 32 }
 0x161   : > { %p5160_p8 = scmp.ne.s32.totalorder %s560_s24, %s5159_s30  ;;  %p5167_p0 = scmp.lt.s32.totalorder %s560_s24, %s560_s24 }
 0x162   : > { %p5168_p6 = scmp.lt.s32.totalorder %s5166_s3, %s5159_s30 }
 0x163   : > { %p5162_p9 = pnand %p5160_p8, %p5783_p13 }
 0x164   : > { %p5169_p7 = por %p5168_p6, %p5167_p0 }
 0x165   : > { %p5163_p11 = pneg %p5162_p9 }
 0x167   : > { %p5170_p1 = pnand %p5169_p7, %p5163_p11 }
 0x169   : > { %5173 = shalt.err (!%p5170_p1)
}
 0x16a   : > { %4644 = dma.hbm_to_vmem [thread:$0]  (!%p6663_p10), %s6664_s6, 16, %s560_s24, [#allocation11]  }
 0x16b   : > { %s5174_s16 = scalar_lea.hbm %s6565_s8, 512 }
 0x16c   : > { %p5175_p3 = scmp.ne.s32.totalorder %s6565_s8, %s5174_s16  ;;  %p5181_p1 = scmp.lt.u32.totalorder %s5174_s16, %s6565_s8 }
 0x16e   : > { %p5177_p12 = pnand %p5175_p3, %p5783_p13 }
 0x170   : > { %p5178_p2 = pneg %p5177_p12 }
 0x172   : > { %p5183_p4 = pnand %p5181_p1, %p5178_p2 }
 0x174   : > { %5186 = shalt.err (!%p5183_p4)
}
 0x175   : > { %s5187_s18 = scalar_lea.vmem %s581_s23, 512  ;;  %p5195_p11 = scmp.lt.s32.totalorder %s581_s23, %s581_s23 }
 0x176   : > { %p5188_p5 = scmp.ne.s32.totalorder %s581_s23, %s5187_s18  ;;  %p5196_p0 = scmp.lt.s32.totalorder %s5187_s18, %s5187_s18 }
 0x178   : > { %p5190_p8 = pnand %p5188_p5, %p5783_p13  ;;  %p5197_p6 = por %p5196_p0, %p5195_p11 }
 0x17a   : > { %p5191_p9 = pneg %p5190_p8 }
 0x17c   : > { %p5198_p7 = pnand %p5197_p6, %p5191_p9 }
 0x17e   : > { %5201 = shalt.err (!%p5198_p7)
}
 0x17f   : > { %4650 = dma.hbm_to_vmem [thread:$0]  (!%p6663_p10), %s6565_s8, 512, %s581_s23, [#allocation14], %s5523_s1, %s5523_s1, %s5524_s26  }
 0x180   : > { %s5527_s3 = smov [#allocation18]   ;;  %s5528_s22 = smov [#allocation21]  }
 0x181   : > { %s604_s5 = sshll.u32 %s5527_s3, 4  ;;  %s629_s7 = sshll.u32 %s5528_s22, 4  ;;  %s605_s5 = int_to_ptr.vmem [resolvable:$true] %s604_s5  ;;  %s630_s7 = int_to_ptr.vmem [resolvable:$true] %s629_s7 }
 0x182   : > { %s5202_s4 = scalar_lea.hbm %s6567_s10, 512 }
 0x183   : > { %p5203_p3 = scmp.ne.s32.totalorder %s6567_s10, %s5202_s4  ;;  %p5209_p1 = scmp.lt.u32.totalorder %s5202_s4, %s6567_s10 }
 0x185   : > { %p5205_p12 = pnand %p5203_p3, %p5783_p13 }
 0x187   : > { %p5206_p2 = pneg %p5205_p12 }
 0x189   : > { %p5211_p4 = pnand %p5209_p1, %p5206_p2 }
 0x18b   : > { %5214 = shalt.err (!%p5211_p4)
}
 0x18c   : > { %s5215_s23 = scalar_lea.vmem %s605_s5, 512  ;;  %p5223_p11 = scmp.lt.s32.totalorder %s605_s5, %s605_s5 }
 0x18d   : > { %p5216_p5 = scmp.ne.s32.totalorder %s605_s5, %s5215_s23  ;;  %p5224_p0 = scmp.lt.s32.totalorder %s5215_s23, %s5215_s23 }
 0x18f   : > { %p5218_p8 = pnand %p5216_p5, %p5783_p13  ;;  %p5225_p6 = por %p5224_p0, %p5223_p11 }
 0x191   : > { %p5219_p9 = pneg %p5218_p8 }
 0x193   : > { %p5226_p7 = pnand %p5225_p6, %p5219_p9 }
 0x195   : > { %5229 = shalt.err (!%p5226_p7)
}
 0x196   : > { %4656 = dma.hbm_to_vmem [thread:$0]  (!%p6663_p10), %s6567_s10, 512, %s605_s5, [#allocation17], %s5523_s1, %s5523_s1, %s5524_s26  }
 0x197   : > { %s5230_s9 = scalar_lea.hbm %s6569_s12, 16 }
 0x198   : > { %p5231_p3 = scmp.ne.s32.totalorder %s6569_s12, %s5230_s9  ;;  %p5237_p1 = scmp.lt.u32.totalorder %s5230_s9, %s6569_s12 }
 0x19a   : > { %p5233_p12 = pnand %p5231_p3, %p5783_p13 }
 0x19c   : > { %p5234_p2 = pneg %p5233_p12 }
 0x19e   : > { %p5239_p4 = pnand %p5237_p1, %p5234_p2 }
 0x1a0   : > { %5242 = shalt.err (!%p5239_p4)
}
 0x1a1   : > { %s5243_s28 = scalar_lea.vmem %s630_s7, 16  ;;  %s5250_s5 = scalar_lea.vmem %s630_s7, 32 }
 0x1a2   : > { %p5244_p5 = scmp.ne.s32.totalorder %s630_s7, %s5243_s28  ;;  %p5251_p11 = scmp.lt.s32.totalorder %s630_s7, %s630_s7 }
 0x1a3   : > { %p5252_p0 = scmp.lt.s32.totalorder %s5250_s5, %s5243_s28 }
 0x1a4   : > { %p5246_p8 = pnand %p5244_p5, %p5783_p13 }
 0x1a5   : > { %p5253_p6 = por %p5252_p0, %p5251_p11 }
 0x1a6   : > { %p5247_p9 = pneg %p5246_p8 }
 0x1a8   : > { %p5254_p7 = pnand %p5253_p6, %p5247_p9 }
 0x1aa   : > { %5257 = shalt.err (!%p5254_p7)
}
 0x1ab   : > { %4662 = dma.hbm_to_vmem [thread:$0]  (!%p6663_p10), %s6569_s12, 16, %s630_s7, [#allocation20]  }
 0x1ac   : > { %s5529_s24 = smov [#allocation24]   ;;  %s5530_s3 = smov [#allocation27]  }
 0x1ad   : > { %s650_s30 = sshll.u32 %s5529_s24, 4  ;;  %s674_s22 = sshll.u32 %s5530_s3, 4  ;;  %s651_s30 = int_to_ptr.vmem [resolvable:$true] %s650_s30  ;;  %s675_s22 = int_to_ptr.vmem [resolvable:$true] %s674_s22 }
 0x1ae   : > { %s6665_s4 = sld [smem:[#allocation67_spill]] }
 0x1b4   : > { %s5258_s21 = scalar_lea.hbm %s6665_s4, 512 }
 0x1b5   : > { %p5259_p3 = scmp.ne.s32.totalorder %s6665_s4, %s5258_s21  ;;  %p5265_p1 = scmp.lt.u32.totalorder %s5258_s21, %s6665_s4 }
 0x1b7   : > { %p5261_p12 = pnand %p5259_p3, %p5783_p13 }
 0x1b9   : > { %p5262_p2 = pneg %p5261_p12 }
 0x1bb   : > { %p5267_p4 = pnand %p5265_p1, %p5262_p2 }
 0x1bd   : > { %5270 = shalt.err (!%p5267_p4)
}
 0x1be   : > { %s5271_s7 = scalar_lea.vmem %s651_s30, 512  ;;  %p5279_p11 = scmp.lt.s32.totalorder %s651_s30, %s651_s30 }
 0x1bf   : > { %p5272_p5 = scmp.ne.s32.totalorder %s651_s30, %s5271_s7  ;;  %p5280_p0 = scmp.lt.s32.totalorder %s5271_s7, %s5271_s7 }
 0x1c1   : > { %p5274_p8 = pnand %p5272_p5, %p5783_p13  ;;  %p5281_p6 = por %p5280_p0, %p5279_p11 }
 0x1c3   : > { %p5275_p9 = pneg %p5274_p8 }
 0x1c5   : > { %p5282_p7 = pnand %p5281_p6, %p5275_p9 }
 0x1c7   : > { %5285 = shalt.err (!%p5282_p7)
}
 0x1c8   : > { %4668 = dma.hbm_to_vmem [thread:$0]  (!%p6663_p10), %s6665_s4, 512, %s651_s30, [#allocation23], %s5523_s1, %s5523_s1, %s5524_s26  }
 0x1c9   : > { %s6666_s16 = sld [smem:[#allocation68_spill]] }
 0x1cf   : > { %s5286_s21 = scalar_lea.hbm %s6666_s16, 1024 }
 0x1d0   : > { %p5287_p3 = scmp.ne.s32.totalorder %s6666_s16, %s5286_s21  ;;  %p5293_p1 = scmp.lt.u32.totalorder %s5286_s21, %s6666_s16 }
 0x1d2   : > { %p5289_p12 = pnand %p5287_p3, %p5783_p13 }
 0x1d4   : > { %p5290_p2 = pneg %p5289_p12 }
 0x1d6   : > { %p5295_p4 = pnand %p5293_p1, %p5290_p2 }
 0x1d8   : > { %5298 = shalt.err (!%p5295_p4)
}
 0x1d9   : > { %s5299_s7 = scalar_lea.vmem %s675_s22, 1024  ;;  %p5307_p11 = scmp.lt.s32.totalorder %s675_s22, %s675_s22 }
 0x1da   : > { %p5300_p5 = scmp.ne.s32.totalorder %s675_s22, %s5299_s7  ;;  %p5308_p0 = scmp.lt.s32.totalorder %s5299_s7, %s5299_s7 }
 0x1dc   : > { %p5302_p8 = pnand %p5300_p5, %p5783_p13  ;;  %p5309_p6 = por %p5308_p0, %p5307_p11 }
 0x1de   : > { %p5303_p9 = pneg %p5302_p8 }
 0x1e0   : > { %p5310_p7 = pnand %p5309_p6, %p5303_p9 }
 0x1e2   : > { %5313 = shalt.err (!%p5310_p7)
}
 0x1e3   : > { %4674 = dma.hbm_to_vmem [thread:$0]  (!%p6663_p10), %s6666_s16, 1024, %s675_s22, [#allocation26], %s5523_s1, %s5523_s1, %s5524_s26  }
 0x1e4   : > { %s5531_s24 = smov [#allocation30]   ;;  %s5532_s9 = smov [#allocation31]  }
 0x1e5   : > { %s699_s3 = sshll.u32 %s5531_s24, 4  ;;  %s710_s21 = sshll.u32 %s5532_s9, 4  ;;  %s700_s3 = int_to_ptr.vmem [resolvable:$true] %s699_s3  ;;  %s711_s21 = int_to_ptr.vmem [resolvable:$true] %s710_s21 }
 0x1e6   : > { %s6667_s5 = sld [smem:[#allocation69_spill]] }
 0x1ec   : > { %s5314_s18 = scalar_lea.hbm %s6667_s5, 16 }
 0x1ed   : > { %p5315_p3 = scmp.ne.s32.totalorder %s6667_s5, %s5314_s18  ;;  %p5321_p1 = scmp.lt.u32.totalorder %s5314_s18, %s6667_s5 }
 0x1ef   : > { %p5317_p12 = pnand %p5315_p3, %p5783_p13 }
 0x1f1   : > { %p5318_p2 = pneg %p5317_p12 }
 0x1f3   : > { %p5323_p4 = pnand %p5321_p1, %p5318_p2 }
 0x1f5   : > { %5326 = shalt.err (!%p5323_p4)
}
 0x1f6   : > { %s5327_s1 = scalar_lea.vmem %s700_s3, 16  ;;  %s5334_s26 = scalar_lea.vmem %s700_s3, 32 }
 0x1f7   : > { %p5328_p5 = scmp.ne.s32.totalorder %s700_s3, %s5327_s1  ;;  %p5335_p11 = scmp.lt.s32.totalorder %s700_s3, %s700_s3 }
 0x1f8   : > { %p5336_p0 = scmp.lt.s32.totalorder %s5334_s26, %s5327_s1 }
 0x1f9   : > { %p5330_p8 = pnand %p5328_p5, %p5783_p13 }
 0x1fa   : > { %p5337_p6 = por %p5336_p0, %p5335_p11 }
 0x1fb   : > { %p5331_p9 = pneg %p5330_p8 }
 0x1fd   : > { %p5338_p7 = pnand %p5337_p6, %p5331_p9 }
 0x1ff   : > { %5341 = shalt.err (!%p5338_p7)
}
 0x200   : > { %4680 = dma.hbm_to_vmem [thread:$0]  (!%p6663_p10), %s6667_s5, 16, %s700_s3, [#allocation29]  }
 0x201   : > { %s6668_s24 = sld [smem:[#allocation70_spill]] }
 0x207   : > { %s6669_s9 = smov %s6668_s24  ;;  %s5342_s25 = scalar_lea.hbm %s6668_s24, 16 }
 0x208   : > { %p5343_p3 = scmp.ne.s32.totalorder %s6669_s9, %s5342_s25  ;;  %p5349_p1 = scmp.lt.u32.totalorder %s5342_s25, %s6669_s9 }
 0x20a   : > { %p5345_p12 = pnand %p5343_p3, %p5783_p13 }
 0x20c   : > { %p5346_p2 = pneg %p5345_p12 }
 0x20e   : > { %p5351_p4 = pnand %p5349_p1, %p5346_p2 }
 0x210   : > { %5354 = shalt.err (!%p5351_p4)
}
 0x211   : > { %s5355_s1 = scalar_lea.vmem %s711_s21, 16  ;;  %s5362_s3 = scalar_lea.vmem %s711_s21, 32 }
 0x212   : > { %p5356_p5 = scmp.ne.s32.totalorder %s711_s21, %s5355_s1  ;;  %p5363_p11 = scmp.lt.s32.totalorder %s711_s21, %s711_s21 }
 0x213   : > { %p5364_p0 = scmp.lt.s32.totalorder %s5362_s3, %s5355_s1 }
 0x214   : > { %p5358_p8 = pnand %p5356_p5, %p5783_p13 }
 0x215   : > { %p5365_p6 = por %p5364_p0, %p5363_p11 }
 0x216   : > { %p5359_p9 = pneg %p5358_p8 }
 0x218   : > { %p5366_p7 = pnand %p5365_p6, %p5359_p9 }
 0x21a   : > { %5369 = shalt.err (!%p5366_p7)
}
 0x21b   : > { %s6670_s4 = sld [smem:[#allocation50_spill]]  ;;  %s6671_s6 = sld [smem:[#allocation49_spill]] }
 0x21c   : > { %4683 = dma.hbm_to_vmem [thread:$0]  (!%p6663_p10), %s6669_s9, 16, %s711_s21, [#allocation32]  }
 0x21d   : > { %s6673_s7 = sld [smem:[#allocation61_spill]]  ;;  %p6674_p3 = scmp.ne.s32.totalorder %s6653_s29, 0 }
 0x221   : > { %s4148_s23 = sshll.u32 %s6670_s4, 4  ;;  %s6672_s24 = sand.u32 1, %s6671_s6  }
 0x222   : > { %s760_s14 = scalar_lea.vmem [#allocation8], %s6672_s24 }
 0x223   : > { %s767_s25 = sshll.u32 %s760_s14, 4  ;;  %s765_s30 = scalar_lea.hbm %s6673_s7, %s4148_s23  ;;  %s768_s25 = int_to_ptr.vmem [resolvable:$true] %s767_s25 }
 0x224   : > { %s5370_s1 = scalar_lea.hbm %s765_s30, 16  ;;  %s5375_s26 = scalar_lea.hbm %s6673_s7, 32 }
 0x225   : > { %p5371_p13 = scmp.ne.s32.totalorder %s765_s30, %s5370_s1  ;;  %p5376_p10 = scmp.lt.u32.totalorder %s765_s30, %s6673_s7 }
 0x226   : > { %p5377_p1 = scmp.lt.u32.totalorder %s5375_s26, %s5370_s1  ;;  %p5379_p5 = scmp.lt.u32.totalorder %s5370_s1, %s765_s30 }
 0x227   : > { %p5373_p12 = pnand %p5371_p13, %p6674_p3 }
 0x228   : > { %p5378_p4 = por %p5377_p1, %p5376_p10 }
 0x229   : > { %p5374_p2 = pneg %p5373_p12 }
 0x22a   : > { %p5380_p8 = por %p5379_p5, %p5378_p4 }
 0x22c   : > { %p5381_p9 = pnand %p5380_p8, %p5374_p2 }
 0x22e   : > { %5384 = shalt.err (!%p5381_p9)
}
 0x22f   : > { %s5385_s4 = scalar_lea.vmem %s768_s25, 16  ;;  %s5533_s6 = smov [#allocation8]  }
 0x230   : > { %p5386_p11 = scmp.ne.s32.totalorder %s768_s25, %s5385_s4  ;;  %s5390_s23 = sshll.u32 %s5533_s6, 4  ;;  %s5391_s23 = int_to_ptr.vmem [resolvable:$false] %s5390_s23 }
 0x231   : > { %s5392_s24 = scalar_lea.vmem %s5391_s23, 32  ;;  %p5393_p7 = scmp.lt.s32.totalorder %s768_s25, %s5391_s23 }
 0x232   : > { %p5388_p0 = pnand %p5386_p11, %p6674_p3  ;;  %p5394_p13 = scmp.lt.s32.totalorder %s5392_s24, %s5385_s4 }
 0x234   : > { %p5389_p6 = pneg %p5388_p0  ;;  %p5395_p12 = por %p5394_p13, %p5393_p7 }
 0x236   : > { %p5396_p1 = pnand %p5395_p12, %p5389_p6 }
 0x238   : > { %5399 = shalt.err (!%p5396_p1)
}
 0x239   : > { %p6675_p10 = scmp.ne.s32.totalorder %s6650_s2, 0  ;;  %s6676_s14 = sld [smem:[#allocation57_spill]] }
 0x23b   : > { %4693 = dma.hbm_to_vmem [thread:$0]  (!%p6675_p10), %s765_s30, 16, %s768_s25, %s5743_s0  }
 0x23f   : > { %p6677_p2 = scmp.ne.s32.totalorder %s6676_s14, 0 }
 0x240   : > { %s6678_s28 = sld [smem:[#allocation51_spill]] (!%p6677_p2)  ;;  %s6679_s29 = sld [smem:[#allocation48_spill]] (!%p6677_p2) }
 0x241   : > { %776 = sbr.rel (%p6677_p2) target bundleno = 6690 (0x1a22), region = 100  ;;  %s6680_s18 = sld [smem:[#allocation54_spill]] (!%p6677_p2) }
 0x246   : > { %s778_s1 = sand.u32 (!%p6677_p2), 1, %s6678_s28   ;;  %s6180_s27 = sand.u32 (!%p6677_p2), 1, %s6679_s29  }
 0x247   : > { %s6183_s3 = sshll.u32 (!%p6677_p2), %s6180_s27, 3  ;;  %s779_s26 = scalar_lea.sflag (!%p6677_p2), [#allocation3], %s778_s1 }
 0x248   : > { %s782_s22 = scalar_lea.vmem [#allocation2], %s6183_s3  ;;  %p6681_p3 = scmp.ne.s32.totalorder %s6680_s18, 0 }
 0x24a   : > { %5445 = dma.done.wait (%p6681_p3), %s779_s26, 128  }
 0x24b   : > { %5447 = vsyncadd (%p6681_p3), %s779_s26, 4294967168  ;;  %p6682_p4 = scmp.eq.s32.totalorder %s6678_s28, 0 }
 0x24d   : > { %5449 = dma.done.wait (%p6682_p4), [#allocation6], 128   ;;  %p6683_p5 = pmov %p6682_p4 }
 0x24e   : > { %s795_s2 = scalar_lea.vmem [#allocation7], %s6183_s3 }
 0x24f   : > { %5451 = vsyncadd (%p6683_p5), [#allocation6], 4294967168 }
 0x250   : > { %5453 = dma.done.wait (%p6681_p3), %s779_s26, 144  }
 0x251   : > { %5455 = vsyncadd (%p6681_p3), %s779_s26, 4294967152  ;;  %s803_s0 = scalar_lea.vmem [#allocation8], %s6180_s27  ;;  %p6684_p8 = pmov %p6682_p4 }
 0x252   : > { %p6685_p9 = pmov %p6682_p4 }
 0x253   : > { %5457 = dma.done.wait (%p6684_p8), [#allocation6], 256  }
 0x254   : > { %5459 = vsyncadd (%p6685_p9), [#allocation6], 4294967040  ;;  %p6686_p11 = pmov %p6682_p4 }
 0x255   : > { %p6687_p0 = pmov %p6682_p4 }
 0x256   : > { %5461 = dma.done.wait (%p6686_p11), [#allocation11], 32  }
 0x257   : > { %5463 = vsyncadd (%p6687_p0), [#allocation11], 4294967264  ;;  %p6688_p6 = pmov %p6687_p0 }
 0x258   : > { %p6689_p7 = pmov %p6687_p0 }
 0x259   : > { %5465 = dma.done.wait (%p6688_p6), [#allocation14], 528  }
 0x25a   : > { %5467 = vsyncadd (%p6689_p7), [#allocation14], 4294966768  ;;  %p6690_p13 = pmov %p6687_p0 }
 0x25b   : > { %p6691_p12 = pmov %p6687_p0 }
 0x25c   : > { %5469 = dma.done.wait (%p6690_p13), [#allocation17], 528  }
 0x25d   : > { %5471 = vsyncadd (%p6691_p12), [#allocation17], 4294966768  ;;  %p6692_p1 = pmov %p6687_p0 }
 0x25e   : > { %p6693_p10 = pmov %p6687_p0 }
 0x25f   : > { %5473 = dma.done.wait (%p6692_p1), [#allocation20], 32  }
 0x260   : > { %5475 = vsyncadd (%p6693_p10), [#allocation20], 4294967264  ;;  %p6694_p2 = pmov %p6687_p0 }
 0x261   : > { %p6695_p3 = pmov %p6687_p0 }
 0x262   : > { %5477 = dma.done.wait (%p6694_p2), [#allocation23], 528  }
 0x263   : > { %5479 = vsyncadd (%p6695_p3), [#allocation23], 4294966768  ;;  %p6696_p4 = pmov %p6687_p0 }
 0x264   : > { %p6697_p5 = pmov %p6687_p0 }
 0x265   : > { %5481 = dma.done.wait (%p6696_p4), [#allocation26], 1040  }
 0x266   : > { %5483 = vsyncadd (%p6697_p5), [#allocation26], 4294966256  ;;  %p6698_p8 = pmov %p6687_p0 }
 0x267   : > { %p6699_p9 = pmov %p6687_p0 }
 0x268   : > { %5485 = dma.done.wait (%p6698_p8), [#allocation29], 32  }
 0x269   : > { %5487 = vsyncadd (%p6699_p9), [#allocation29], 4294967264  ;;  %p6700_p11 = pmov %p6687_p0 }
 0x26b   : > { %5489 = dma.done.wait (%p6700_p11), [#allocation32], 16  }
 0x26c   : > { %5491 = vsyncadd (%p6687_p0), [#allocation32], 4294967280  ;;  %v5534_v0 = vmov 0.0|0.0   ;;  %vm5535_vm0 = vmmov 0   ;;  %v5536_v1 = vmov 0.0   ;;  %v965_v2 = vld [vmem:[#allocation9] sm:$0xff] }
 0x26d   : > { %4493 = vmatprep.subr.bf16.mxu0 %v5534_v0  ;;  %4306 = vmatprep.mubr.msk.f32.mxu0 %vm5535_vm0, %v5536_v1  ;;  %v966_v3 = vld [vmem:[#allocation9 + $0x8] sm:$0xff]  ;;  %v964_v5 = vld [vmem:[%s782_s22] sm:$0xff]  ;;  %vm974_vm1 = vcmask 130048   ;;  %v4171_v6 = vld [vmem:[#allocation10] ss:$0 sm:$0xff]  ;;  %vm1054_vm2 = vcmask 261120  }
 0x26e   : > { %4320 = vmatprep.subr.mxu1 %v5536_v1  ;;  %4322 = vmatprep.mubr.msk.f32.mxu1 %vm5535_vm0, %v5536_v1  ;;  %v4494_v4 = vpack.c.bf16 %v966_v3, %v965_v2  ;;  %v1048_v8 = vld [vmem:[#allocation5] sm:$0xff]  ;;  %v1050_v11 = vld [vmem:[%s795_s2] sm:$0xff]  ;;  %v934_v21 = vld [vmem:[#allocation15 + $0x8] sm:$0xff]  ;;  %vm1326_vm3 = vcmask 64512   ;;  %vm2385_vm4 = vcmask 523264   ;;  %s6701_s25 = sld [smem:[#allocation55_spill]] }
 0x26f   : > { %v933_v20 = vld [vmem:[#allocation15] sm:$0xff]  ;;  %v935_v23 = vld [vmem:[#allocation15 + $0x10] sm:$0xff]  ;;  %v936_v24 = vld [vmem:[#allocation15 + $0x18] sm:$0xff]  ;;  %s4216_s30 = sshll.u32 %s6678_s28, 7  ;;  %s932_s21 = scalar_lea.vmem [#allocation33], %s6183_s3 }
 0x270   : > { %4495 = vmatpush3.bf16.msra.mxu0 %v4494_v4  ;;  %v6251_v22 = vpack.c.bf16 %v934_v21, %v933_v20  ;;  %v6255_v25 = vpack.c.bf16 %v936_v24, %v935_v23  ;;  %v4173_v30 = vld [vmem:[#allocation12] ss:$0 sm:$0xff]  ;;  %v4174_v32 = vld [vmem:[#allocation13] ss:$0 sm:$0xff]  ;;  %v6265_v35 = vld [vmem:[#allocation16] ss:$0 sm:$0xff] }
 0x271   : > { %4496 = vmatprep.subr.bf16.mxu0 %v5534_v0  ;;  %s3855_s4 = sshll.u32 %s932_s21, 4  ;;  %s6702_s24 = sld [smem:[#allocation71_spill]]  ;;  %s6514_s4 = int_to_ptr.vmem [resolvable:$true] %s3855_s4 }
 0x272   : > { %s3842_s18 = scalar_lea.sflag [#allocation4], %s6180_s27  ;;  %s5400_s28 = scalar_lea.vmem %s6514_s4, 128 }
 0x273   : > { %4307 = vmatmul.mubr.msk.f32.vlgmr.msra.gmra.mrb[0].mxu0 %vm974_vm1, %v964_v5  ;;  %p5401_p6 = scmp.ne.s32.totalorder %s6514_s4, %s5400_s28  ;;  %s5537_s1 = smov [#allocation33]  }
 0x274   : > { %4317 = vmatprep.mubr.msk.f32.mxu0 %vm5535_vm0, %v5536_v1  ;;  %4498 = vmatpush3.bf16.msra.mxu0 %v6251_v22  ;;  %p6704_p7 = scmp.ne.s32.totalorder %s6701_s25, 0  ;;  %s5404_s3 = sshll.u32 %s5537_s1, 4  ;;  %s5405_s3 = int_to_ptr.vmem [resolvable:$false] %s5404_s3 }
 0x275   : > { %4499 = vmatprep.subr.bf16.mxu0 %v5534_v0  ;;  %s5406_s26 = scalar_lea.vmem %s5405_s3, 256  ;;  %p5407_p1 = scmp.lt.s32.totalorder %s6514_s4, %s5405_s3 }
 0x276   : > { %p5402_p13 = pnand %p5401_p6, %p6704_p7  ;;  %p5408_p10 = scmp.lt.s32.totalorder %s5406_s26, %s5400_s28 }
 0x277   : > { %s6703_s14 = smov %s6702_s24  ;;  %s6512_s29 = scalar_lea.hbm %s6702_s24, %s4216_s30 }
 0x278   : > { %4501 = vmatpush3.bf16.msra.mxu0 %v6255_v25  ;;  %p5403_p12 = pneg %p5402_p13  ;;  %p5409_p2 = por %p5408_p10, %p5407_p1 }
 0x279   : > { %4325 = vmatprep.subr.mxu0 %v5536_v1 }
 0x27a   : > { %p5410_p3 = pnand %p5409_p2, %p5403_p12 }
 0x346   : > { %v1044_v7 = vpop.f32.mrb[0].mxu0 }
 0x347   : > { %v1045_v9 = vadd.f32 %v4171_v6, %v1044_v7  ;;  %v4308_v10 = vpop.f32.mrb[1].mxu0 }
 0x349   : > { %v1049_v12 = vadd.f32 %v1048_v8, %v1045_v9 }
 0x34b   : > { %v1051_v13 = vadd.f32 %v1050_v11, %v1049_v12 }
 0x34d   : > { %v1055_v14 = vsel %vm1054_vm2, %v1051_v13, 0.0 }
 0x34e   : > { %1056 = vadd.xlane.f32.xlu0 %v1055_v14 }
 0x3db   : > { %v1057_v15 = vpop.xlane.xlu0 %1056 }
 0x3dc   : > { %v1059_v16 = vmul.f32 0.03125, %v1057_v15  ;;  %v961_v15 = vld [vmem:[%s803_s0] sm:$0x1] }
 0x3de   : > { %v1060_v17 = vsub.f32 %v1051_v13, %v1059_v16  ;;  %v4170_v16 = vadd.f32 -1.0, %v961_v15 }
 0x3e0   : > { %v1061_v18 = vmul.f32 %v1060_v17, %v1060_v17  ;;  %v6298_v23 = vmul.f32 1e+09, %v4170_v16 }
 0x3e2   : > { %v1062_v19 = vsel %vm1054_vm2, %v1061_v18, 0.0 }
 0x3e3   : > { %1063 = vadd.xlane.f32.xlu0 %v1062_v19 }
 0x470   : > { %v1064_v26 = vpop.xlane.xlu0 %1063 }
 0x471   : > { %v1065_v27 = vmul.f32 0.03125, %v1064_v26 }
 0x473   : > { %v1066_v28 = vadd.f32 1e-12, %v1065_v27 }
 0x475   : > { %4788 = vrsqrt.f32 %v1066_v28 }
 0x47f   : > { %v4789_v29 = vpop.eup %4788 }
 0x480   : > { %v1068_v31 = vmul.f32 %v4789_v29, %v1060_v17  ;;  %v1367_v17 = vlaneseq }
 0x482   : > { %v1075_v33 = vmul.f32 %v4173_v30, %v1068_v31  ;;  %v1368_v24 = vshrl.u32 %v1367_v17, 7 }
 0x484   : > { %v6259_v34 = vadd.f32 %v4174_v32, %v1075_v33  ;;  %v6300_v30 = vsub.s32 0, %v1368_v24 }
 0x486   : > { %4318 = vmatmul.mubr.msk.f32.vlgmr.msra.gmra.mrb[2].mxu0 %vm1054_vm2, %v6259_v34 }
 0x487   : > { %4327 = vmatprep.mubr.msk.f32.mxu0 %vm5535_vm0, %v5536_v1 }
 0x559   : > { %v1158_v36 = vpop.f32.mrb[2].mxu0 }
 0x55a   : > { %v4319_v37 = vpop.f32.mrb[3].mxu0  ;;  %v1159_v38 = vadd.f32 %v6265_v35, %v1158_v36 }
 0x55c   : > { %1162 = vxpose.xlu1.b32.start.end [1/1] (short) (narrow) %v1159_v38, 96 }
 0x5dc   : > { %v1178_v39 = vpop.trf.xlu1 }
 0x5dd   : > { %1194 = vxpose.xlu1.b32.start.end [1/1] (short) (narrow) %v1178_v39, 8 }
 0x5e0   : > { %v1179_v40 = vpop.trf.xlu1 }
 0x5e1   : > { %1226 = vxpose.xlu0.b32.start.end [1/1] (short) (narrow) %v1179_v40, 8 }
 0x5e4   : > { %v1180_v41 = vpop.trf.xlu1 }
 0x5e5   : > { %1258 = vxpose.xlu1.b32.start.end [1/1] (short) (narrow) %v1180_v41, 8 }
 0x5e8   : > { %v1181_v42 = vpop.trf.xlu1 }
 0x5e9   : > { %1290 = vxpose.xlu0.b32.start.end [1/1] (short) (narrow) %v1181_v42, 8 }
 0x5ec   : > { %v1182_v43 = vpop.trf.xlu1 }
 0x5ed   : > { %4321 = vmatpush3.msra.mxu1 %v1182_v43  ;;  %v1322_v55 = vmul.f32 %v1182_v43, %v1182_v43 }
 0x5ee   : > { %4330 = vmatprep.subr.mxu1 %v5536_v1 }
 0x5ef   : > { %v1327_v56 = vsel %vm1326_vm3, %v1322_v55, 0.0 }
 0x5f0   : > { %v1183_v44 = vpop.trf.xlu1  ;;  %v1328_v58 = vrot.slane %v1327_v56, 4 }
 0x5f1   : > { %4326 = vmatpush3.msra.mxu0 %v1183_v44  ;;  %v1323_v57 = vmul.f32 %v1183_v44, %v1183_v44 }
 0x5f2   : > { %4335 = vmatprep.subr.mxu0 %v5536_v1  ;;  %v1329_v61 = vadd.f32 %v1328_v58, %v1327_v56 }
 0x5f3   : > { %v1334_v59 = vsel %vm1326_vm3, %v1323_v57, 0.0 }
 0x5f4   : > { %v1184_v45 = vpop.trf.xlu1  ;;  %v1335_v62 = vrot.slane %v1334_v59, 4  ;;  %v1330_v3 = vrot.slane %v1329_v61, 2 }
 0x5f5   : > { %v1324_v60 = vmul.f32 %v1184_v45, %v1184_v45 }
 0x5f6   : > { %v1336_v4 = vadd.f32 %v1335_v62, %v1334_v59  ;;  %v1331_v7 = vadd.f32 %v1330_v3, %v1329_v61 }
 0x5f7   : > { %v1341_v63 = vsel %vm1326_vm3, %v1324_v60, 0.0 }
 0x5f8   : > { %v1185_v46 = vpop.trf.xlu1  ;;  %v1342_v5 = vrot.slane %v1341_v63, 4  ;;  %v1337_v8 = vrot.slane %v1336_v4, 2  ;;  %v1332_v11 = vrot.slane %v1331_v7, 1 }
 0x5f9   : > { %v1325_v2 = vmul.f32 %v1185_v46, %v1185_v46 }
 0x5fa   : > { %v1343_v9 = vadd.f32 %v1342_v5, %v1341_v63  ;;  %v1338_v12 = vadd.f32 %v1337_v8, %v1336_v4  ;;  %v1333_v21 = vadd.f32 %v1332_v11, %v1331_v7 }
 0x5fb   : > { %v1348_v6 = vsel %vm1326_vm3, %v1325_v2, 0.0 }
 0x5fc   : > { %v1186_v47 = vpop.trf.xlu1  ;;  %v1349_v10 = vrot.slane %v1348_v6, 4  ;;  %v1344_v13 = vrot.slane %v1343_v9, 2  ;;  %v1339_v18 = vrot.slane %v1338_v12, 1  ;;  %v1355_v28 = vmul.f32 0.17677669, %v1333_v21 }
 0x5fe   : > { %v1350_v14 = vadd.f32 %v1349_v10, %v1348_v6  ;;  %v1345_v19 = vadd.f32 %v1344_v13, %v1343_v9  ;;  %v1340_v29 = vadd.f32 %v1339_v18, %v1338_v12  ;;  %v1359_v32 = vsub.f32 %v6298_v23, %v1355_v28 }
 0x600   : > { %v1187_v48 = vpop.trf.xlu1  ;;  %v1351_v20 = vrot.slane %v1350_v14, 2  ;;  %v1346_v26 = vrot.slane %v1345_v19, 1  ;;  %v1356_v33 = vmul.f32 0.17677669, %v1340_v29  ;;  %v1370_v37 = vrot.slane %v1359_v32, %v6300_v30 }
 0x602   : > { %v1352_v27 = vadd.f32 %v1351_v20, %v1350_v14  ;;  %v1347_v36 = vadd.f32 %v1346_v26, %v1345_v19  ;;  %v1360_v38 = vsub.f32 %v6298_v23, %v1356_v33 }
 0x604   : > { %v6270_v49 = vpop.trf.xlu1  ;;  %v1353_v31 = vrot.slane %v1352_v27, 1  ;;  %v1357_v39 = vmul.f32 0.17677669, %v1347_v36 }
 0x606   : > { %v1354_v40 = vadd.f32 %v1353_v31, %v1352_v27 }
 0x608   : > { %v6272_v50 = vpop.trf.xlu1 }
 0x65d   : > { %v1210_v51 = vpop.trf.xlu1 }
 0x65e   : > { %4323 = vmatmul.mubr.msk.f32.vlgmr.msra.gmra.mrb[0].mxu1 %vm1326_vm3, %v1210_v51 }
 0x65f   : > { %4331 = vmatpush3.msra.mxu1 %v1184_v45  ;;  %4332 = vmatprep.mubr.msk.f32.mxu1 %vm5535_vm0, %v5536_v1  ;;  %v1374_v45 = vrot.slane %v1360_v38, %v6300_v30 }
 0x660   : > { %4340 = vmatprep.subr.mxu1 %v5536_v1 }
 0x661   : > { %v1242_v52 = vpop.trf.xlu0 }
 0x662   : > { %4328 = vmatmul.mubr.msk.f32.vlgmr.msra.gmra.mrb[4].mxu0 %vm1326_vm3, %v1242_v52 }
 0x663   : > { %4336 = vmatpush3.msra.mxu0 %v1185_v46  ;;  %4337 = vmatprep.mubr.msk.f32.mxu0 %vm5535_vm0, %v5536_v1  ;;  %v1361_v46 = vsub.f32 %v6298_v23, %v1357_v39 }
 0x664   : > { %4345 = vmatprep.subr.mxu0 %v5536_v1 }
 0x665   : > { %v1274_v53 = vpop.trf.xlu1 }
 0x666   : > { %4333 = vmatmul.mubr.msk.f32.vlgmr.msra.gmra.mrb[2].mxu1 %vm1326_vm3, %v1274_v53  ;;  %v1378_v53 = vrot.slane %v1361_v46, %v6300_v30 }
 0x667   : > { %4341 = vmatpush3.xpose.msk.msra.mxu1 %vm1326_vm3, %v1186_v47  ;;  %4342 = vmatprep.mubr.msk.f32.mxu1 %vm5535_vm0, %v5536_v1  ;;  %v1358_v47 = vmul.f32 0.17677669, %v1354_v40 }
 0x668   : > { %4350 = vmatprep.subr.mxu1 %v5536_v1 }
 0x669   : > { %v1306_v54 = vpop.trf.xlu0  ;;  %v1362_v55 = vsub.f32 %v6298_v23, %v1358_v47  ;;  %v937_v47 = vld [vmem:[#allocation18] sm:$0xff] }
 0x66a   : > { %4338 = vmatmul.mubr.msk.f32.vlgmr.msra.gmra.mrb[6].mxu0 %vm1326_vm3, %v1306_v54 }
 0x66b   : > { %4346 = vmatpush3.xpose.msk.msra.mxu0 %vm1326_vm3, %v1187_v48  ;;  %4347 = vmatprep.mubr.msk.f32.mxu0 %vm5535_vm0, %v5536_v1  ;;  %v1382_v60 = vrot.slane %v1362_v55, %v6300_v30 }
 0x66c   : > { %4355 = vmatprep.subr.mxu0 %v5536_v1 }
 0x731   : > { %v1456_v41 = vpop.f32.mrb[0].mxu1 }
 0x732   : > { %v1457_v42 = vadd.f32 %v1456_v41, %v1370_v37  ;;  %v4324_v43 = vpop.f32.mrb[1].mxu1 }
 0x734   : > { %v1679_v44 = vsel %vm1326_vm3, %v1457_v42, -inf }
 0x735   : > { %1680 = vmax.xlane.f32.xlu1 %v1679_v44  ;;  %v1529_v48 = vpop.f32.mrb[4].mxu0 }
 0x736   : > { %v1530_v51 = vadd.f32 %v1529_v48, %v1374_v45  ;;  %v4329_v52 = vpop.f32.mrb[5].mxu0  ;;  %v938_v48 = vld [vmem:[#allocation18 + $0x8] sm:$0xff] }
 0x737   : > { %v6336_v52 = vpack.c.bf16 %v938_v48, %v937_v47 }
 0x738   : > { %v1682_v54 = vsel %vm1326_vm3, %v1530_v51, -inf }
 0x739   : > { %v1602_v56 = vpop.f32.mrb[2].mxu1  ;;  %1683 = vmax.xlane.f32.xlu0 %v1682_v54 }
 0x73a   : > { %v1603_v57 = vadd.f32 %v1602_v56, %v1378_v53  ;;  %v4334_v58 = vpop.f32.mrb[3].mxu1  ;;  %v940_v53 = vld [vmem:[#allocation18 + $0x18] sm:$0xff] }
 0x73c   : > { %v1685_v59 = vsel %vm1326_vm3, %v1603_v57, -inf }
 0x73d   : > { %1686 = vmax.xlane.f32.xlu1 %v1685_v59  ;;  %v1675_v61 = vpop.f32.mrb[6].mxu0 }
 0x73e   : > { %v1676_v62 = vadd.f32 %v1675_v61, %v1382_v60  ;;  %v4339_v63 = vpop.f32.mrb[7].mxu0  ;;  %v6347_v60 = vld [vmem:[#allocation19] ss:$0 sm:$0xff] }
 0x740   : > { %v1688_v2 = vsel %vm1326_vm3, %v1676_v62, -inf }
 0x741   : > { %1689 = vmax.xlane.f32.xlu1 %v1688_v2 }
 0x7c2   : > { %v1681_v3 = vpop.xlane.xlu1 %1680 }
 0x7c3   : > { %v1691_v4 = vsub.f32 %v1457_v42, %v1681_v3 }
 0x7c5   : > { %v1695_v5 = vmul.f32 1.442695, %v1691_v4 }
 0x7c6   : > { %v1684_v6 = vpop.xlane.xlu0 %1683 }
 0x7c7   : > { %4790 = vpow2.f32 %v1695_v5  ;;  %v1692_v7 = vsub.f32 %v1530_v51, %v1684_v6  ;;  %v939_v51 = vld [vmem:[#allocation18 + $0x10] sm:$0xff] }
 0x7c8   : > { %v6339_v54 = vpack.c.bf16 %v940_v53, %v939_v51 }
 0x7c9   : > { %v1697_v8 = vmul.f32 1.442695, %v1692_v7 }
 0x7ca   : > { %v1687_v9 = vpop.xlane.xlu1 %1686 }
 0x7cb   : > { %4792 = vpow2.f32 %v1697_v8  ;;  %v1693_v10 = vsub.f32 %v1603_v57, %v1687_v9  ;;  %v941_v9 = vld [vmem:[#allocation24] sm:$0xff] }
 0x7cd   : > { %v1699_v11 = vmul.f32 1.442695, %v1693_v10  ;;  %v942_v10 = vld [vmem:[#allocation24 + $0x8] sm:$0xff] }
 0x7ce   : > { %v1690_v12 = vpop.xlane.xlu1 %1689 }
 0x7cf   : > { %4794 = vpow2.f32 %v1699_v11  ;;  %v1694_v13 = vsub.f32 %v1676_v62, %v1690_v12  ;;  %v6353_v11 = vpack.c.bf16 %v942_v10, %v941_v9  ;;  %v943_v12 = vld [vmem:[#allocation24 + $0x10] sm:$0xff] }
 0x7d1   : > { %v4791_v14 = vpop.eup %4790  ;;  %v1701_v15 = vmul.f32 1.442695, %v1694_v13  ;;  %v944_v13 = vld [vmem:[#allocation24 + $0x18] sm:$0xff] }
 0x7d2   : > { %v1703_v16 = vsel %vm1326_vm3, %v4791_v14, 0.0 }
 0x7d3   : > { %4796 = vpow2.f32 %v1701_v15  ;;  %1704 = vadd.xlane.f32.xlu1 %v1703_v16 }
 0x7d5   : > { %v4793_v17 = vpop.eup %4792 }
 0x7d6   : > { %v1706_v18 = vsel %vm1326_vm3, %v4793_v17, 0.0 }
 0x7d7   : > { %1707 = vadd.xlane.f32.xlu0 %v1706_v18  ;;  %v6361_v18 = vld [vmem:[#allocation21] ss:$0 sm:$0xff] }
 0x7d9   : > { %v4795_v19 = vpop.eup %4794 }
 0x7da   : > { %v1709_v20 = vsel %vm1326_vm3, %v4795_v19, 0.0 }
 0x7db   : > { %1710 = vadd.xlane.f32.xlu1 %v1709_v20  ;;  %v6363_v20 = vld [vmem:[#allocation22] ss:$0 sm:$0xff] }
 0x7dd   : > { %v4797_v21 = vpop.eup %4796 }
 0x7de   : > { %v1712_v24 = vsel %vm1326_vm3, %v4797_v21, 0.0 }
 0x7df   : > { %1713 = vadd.xlane.f32.xlu0 %v1712_v24 }
 0x860   : > { %v1705_v26 = vpop.xlane.xlu1 %1704 }
 0x861   : > { %4798 = vrcp.f32 %v1705_v26  ;;  %v945_v26 = vld [vmem:[#allocation27] sm:$0xff] }
 0x864   : > { %v1708_v27 = vpop.xlane.xlu0 %1707 }
 0x865   : > { %4800 = vrcp.f32 %v1708_v27  ;;  %v946_v27 = vld [vmem:[#allocation27 + $0x8] sm:$0xff] }
 0x868   : > { %v1711_v28 = vpop.xlane.xlu1 %1710 }
 0x869   : > { %4802 = vrcp.f32 %v1711_v28  ;;  %v6374_v28 = vpack.c.bf16 %v946_v27, %v945_v26 }
 0x86b   : > { %v4799_v29 = vpop.eup %4798 }
 0x86c   : > { %v1719_v31 = vmul.f32 %v4799_v29, %v4791_v14  ;;  %v1714_v32 = vpop.xlane.xlu0 %1713  ;;  %v947_v29 = vld [vmem:[#allocation27 + $0x10] sm:$0xff] }
 0x86d   : > { %4804 = vrcp.f32 %v1714_v32  ;;  %v949_v32 = vld [vmem:[#allocation27 + $0x20] sm:$0xff] }
 0x86e   : > { %4343 = vmatmul.mubr.msk.f32.vlgmr.msra.gmra.mrb[4].mxu1 %vm1326_vm3, %v1719_v31  ;;  %v948_v31 = vld [vmem:[#allocation27 + $0x18] sm:$0xff] }
 0x86f   : > { %v4801_v33 = vpop.eup %4800  ;;  %4351 = vmatpush3.xpose.msk.msra.mxu1 %vm1326_vm3, %v6270_v49  ;;  %4352 = vmatprep.mubr.msk.f32.mxu1 %vm5535_vm0, %v5536_v1 }
 0x870   : > { %v1720_v36 = vmul.f32 %v4801_v33, %v4793_v17  ;;  %4502 = vmatprep.subr.bf16.mxu1 %v5534_v0 }
 0x872   : > { %4348 = vmatmul.mubr.msk.f32.vlgmr.msra.gmra.mrb[8].mxu0 %vm1326_vm3, %v1720_v36  ;;  %v951_v36 = vld [vmem:[#allocation27 + $0x30] sm:$0xff] }
 0x873   : > { %v4803_v37 = vpop.eup %4802  ;;  %4356 = vmatpush3.xpose.msk.msra.mxu0 %vm1326_vm3, %v6272_v50  ;;  %4357 = vmatprep.mubr.msk.f32.mxu0 %vm5535_vm0, %v5536_v1 }
 0x874   : > { %v1721_v38 = vmul.f32 %v4803_v37, %v4795_v19  ;;  %4508 = vmatprep.subr.bf16.mxu0 %v5534_v0  ;;  %v952_v37 = vld [vmem:[#allocation27 + $0x38] sm:$0xff] }
 0x876   : > { %4353 = vmatmul.mubr.msk.f32.vlgmr.msra.gmra.mrb[6].mxu1 %vm1326_vm3, %v1721_v38  ;;  %v6386_v38 = vpack.c.bf16 %v952_v37, %v951_v36 }
 0x877   : > { %v4805_v49 = vpop.eup %4804  ;;  %4368 = vmatprep.mubr.msk.f32.mxu1 %vm5535_vm0, %v5536_v1  ;;  %4504 = vmatpush3.bf16.msra.mxu1 %v6336_v52 }
 0x878   : > { %v1722_v39 = vmul.f32 %v4805_v49, %v4797_v21  ;;  %4505 = vmatprep.subr.bf16.mxu1 %v5534_v0  ;;  %v6390_v49 = vld [vmem:[#allocation25] ss:$0 sm:$0xff] }
 0x87a   : > { %4358 = vmatmul.mubr.msk.f32.vlgmr.msra.gmra.mrb[10].mxu0 %vm1326_vm3, %v1722_v39 }
 0x87b   : > { %4379 = vmatprep.mubr.msk.f32.mxu0 %vm5535_vm0, %v5536_v1  ;;  %4507 = vmatpush3.bf16.msra.mxu1 %v6339_v54 }
 0x87c   : > { %4514 = vmatprep.subr.bf16.mxu1 %v5534_v0  ;;  %4510 = vmatpush3.bf16.msra.mxu0 %v6353_v11 }
 0x87d   : > { %4511 = vmatprep.subr.bf16.mxu0 %v5534_v0 }
 0x941   : > { %v1795_v40 = vpop.f32.mrb[4].mxu1 }
 0x942   : > { %2027 = vxpose.xlu1.b32.start.end [1/1] (short) (narrow) %v1795_v40, 8  ;;  %v4344_v50 = vpop.f32.mrb[5].mxu1 }
 0x945   : > { %v1871_v41 = vpop.f32.mrb[8].mxu0 }
 0x946   : > { %2059 = vxpose.xlu0.b32.start.end [1/1] (short) (narrow) %v1871_v41, 8  ;;  %v4349_v42 = vpop.f32.mrb[9].mxu0 }
 0x949   : > { %v1947_v43 = vpop.f32.mrb[6].mxu1 }
 0x94a   : > { %v4354_v44 = vpop.f32.mrb[7].mxu1  ;;  %2091 = vxpose.xlu0.b32.start.end [1/1] (short) (narrow) %v1947_v43, 8 }
 0x94d   : > { %v2023_v45 = vpop.f32.mrb[10].mxu0 }
 0x94e   : > { %2123 = vxpose.xlu0.b32.start.end [1/1] (short) (narrow) %v2023_v45, 8  ;;  %v4359_v46 = vpop.f32.mrb[11].mxu0 }
 0x94f   : > { %v6396_v46 = vld [vmem:[#allocation28] ss:$0 sm:$0xff] }
 0x9c2   : > { %v2043_v55 = vpop.trf.xlu1 }
 0x9c3   : > { %2155 = vxpose.xlu1.b32.start [1/4] (short) (narrow) %v2043_v55, 8 }
 0x9c6   : > { %v2075_v56 = vpop.trf.xlu0 }
 0x9c7   : > { %2156 = vxpose.xlu1.b32.cont [2/4] (short) (narrow) %v2075_v56, 8 }
 0x9ca   : > { %v2107_v57 = vpop.trf.xlu0 }
 0x9cb   : > { %2157 = vxpose.xlu1.b32.cont [3/4] (short) (narrow) %v2107_v57, 8 }
 0x9ce   : > { %v2139_v58 = vpop.trf.xlu0 }
 0x9cf   : > { %2158 = vxpose.xlu1.b32.end [4/4] (short) (narrow) %v2139_v58, 8 }
 0xa43   : > { %v2171_v59 = vpop.trf.xlu1 }
 0xa44   : > { %4369 = vmatmul.mubr.msk.f32.vlgmr.msra.gmra.mrb[8].mxu1 %vm1054_vm2, %v2171_v59 }
 0xa45   : > { %4398 = vmatprep.mubr.msk.f32.mxu1 %vm5535_vm0, %v5536_v1  ;;  %4516 = vmatpush3.bf16.msra.mxu1 %v6374_v28 }
 0xa46   : > { %4517 = vmatprep.subr.bf16.mxu1 %v5534_v0 }
 0xb17   : > { %v2262_v61 = vpop.f32.mrb[8].mxu1 }
 0xb18   : > { %v2263_v62 = vadd.f32 %v6347_v60, %v2262_v61  ;;  %v4370_v63 = vpop.f32.mrb[9].mxu1 }
 0xb1a   : > { %v2266_v2 = vadd.f32 %v2263_v62, %v6259_v34  ;;  %v6357_v34 = vpack.c.bf16 %v944_v13, %v943_v12 }
 0xb1c   : > { %v2267_v3 = vsel %vm1054_vm2, %v2266_v2, 0.0  ;;  %4513 = vmatpush3.bf16.msra.mxu0 %v6357_v34 }
 0xb1d   : > { %2268 = vadd.xlane.f32.xlu0 %v2267_v3  ;;  %4526 = vmatprep.subr.bf16.mxu0 %v5534_v0 }
 0xbaa   : > { %v2269_v4 = vpop.xlane.xlu0 %2268 }
 0xbab   : > { %v2270_v5 = vmul.f32 0.03125, %v2269_v4  ;;  %v6401_v4 = vld [vmem:[#allocation30] ss:$0 sm:$0xff] }
 0xbad   : > { %v2271_v6 = vsub.f32 %v2266_v2, %v2270_v5 }
 0xbaf   : > { %v2272_v7 = vmul.f32 %v2271_v6, %v2271_v6 }
 0xbb1   : > { %v2273_v8 = vsel %vm1054_vm2, %v2272_v7, 0.0 }
 0xbb2   : > { %2274 = vadd.xlane.f32.xlu1 %v2273_v8 }
 0xc3f   : > { %v2275_v14 = vpop.xlane.xlu1 %2274 }
 0xc40   : > { %v2276_v15 = vmul.f32 0.03125, %v2275_v14 }
 0xc42   : > { %v2277_v16 = vadd.f32 1e-12, %v2276_v15 }
 0xc44   : > { %4806 = vrsqrt.f32 %v2277_v16 }
 0xc4e   : > { %v4807_v17 = vpop.eup %4806 }
 0xc4f   : > { %v2279_v19 = vmul.f32 %v4807_v17, %v2271_v6  ;;  %v6403_v6 = vld [vmem:[#allocation31] ss:$0 sm:$0xff] }
 0xc51   : > { %v2286_v21 = vmul.f32 %v6361_v18, %v2279_v19 }
 0xc53   : > { %v2293_v24 = vadd.f32 %v6363_v20, %v2286_v21 }
 0xc55   : > { %4380 = vmatmul.mubr.msk.f32.vlgmr.msra.gmra.mrb[12].mxu0 %vm1054_vm2, %v2293_v24 }
 0xc56   : > { %4528 = vmatpush3.bf16.msra.mxu0 %v6251_v22  ;;  %4409 = vmatprep.mubr.msk.f32.mxu0 %vm5535_vm0, %v5536_v1  ;;  %v6378_v22 = vpack.c.bf16 %v948_v31, %v947_v29 }
 0xc57   : > { %4529 = vmatprep.subr.bf16.mxu0 %v5534_v0 }
 0xc58   : > { %4519 = vmatpush3.bf16.msra.mxu1 %v6378_v22 }
 0xc59   : > { %4520 = vmatprep.subr.bf16.mxu1 %v5534_v0 }
 0xc5a   : > { %4531 = vmatpush3.bf16.msra.mxu0 %v6255_v25  ;;  %v950_v25 = vld [vmem:[#allocation27 + $0x28] sm:$0xff] }
 0xc5b   : > { %4412 = vmatprep.subr.mxu0 %v5536_v1  ;;  %v6382_v33 = vpack.c.bf16 %v950_v25, %v949_v32 }
 0xc5d   : > { %4522 = vmatpush3.bf16.msra.mxu1 %v6382_v33 }
 0xc5e   : > { %4523 = vmatprep.subr.bf16.mxu1 %v5534_v0 }
 0xc61   : > { %4525 = vmatpush3.bf16.msra.mxu1 %v6386_v38 }
 0xc62   : > { %4422 = vmatprep.subr.mxu1 %v5536_v1 }
 0xd28   : > { %v2369_v39 = vpop.f32.mrb[12].mxu0 }
 0xd29   : > { %v2370_v40 = vadd.f32 %v6390_v49, %v2369_v39  ;;  %v4381_v50 = vpop.f32.mrb[13].mxu0 }
 0xd2b   : > { %v2375_v41 = vmul.f32 0.70710677, %v2370_v40  ;;  %v2373_v43 = vmul.f32 0.5, %v2370_v40 }
 0xd2d   : > { %4808 = verf.f32 %v2375_v41 }
 0xd37   : > { %v4809_v42 = vpop.eup %4808 }
 0xd38   : > { %v2377_v44 = vadd.f32 1.0, %v4809_v42 }
 0xd3a   : > { %v2378_v45 = vmul.f32 %v2377_v44, %v2373_v43 }
 0xd3c   : > { %4399 = vmatmul.mubr.msk.f32.vlgmr.msra.gmra.mrb[10].mxu1 %vm2385_vm4, %v2378_v45 }
 0xd3d   : > { %4424 = vmatprep.mubr.msk.f32.mxu1 %vm5535_vm0, %v5536_v1 }
 0xe0f   : > { %v2455_v47 = vpop.f32.mrb[10].mxu1 }
 0xe10   : > { %v2456_v48 = vadd.f32 %v6396_v46, %v2455_v47  ;;  %v4400_v51 = vpop.f32.mrb[11].mxu1 }
 0xe12   : > { %v2459_v53 = vadd.f32 %v2456_v48, %v2293_v24 }
 0xe14   : > { %v2460_v55 = vsel %vm1054_vm2, %v2459_v53, 0.0 }
 0xe15   : > { %2461 = vadd.xlane.f32.xlu0 %v2460_v55 }
 0xea2   : > { %v2462_v56 = vpop.xlane.xlu0 %2461 }
 0xea3   : > { %v2463_v57 = vmul.f32 0.03125, %v2462_v56 }
 0xea5   : > { %v2464_v58 = vsub.f32 %v2459_v53, %v2463_v57 }
 0xea7   : > { %v2465_v59 = vmul.f32 %v2464_v58, %v2464_v58 }
 0xea9   : > { %v2466_v61 = vsel %vm1054_vm2, %v2465_v59, 0.0 }
 0xeaa   : > { %2467 = vadd.xlane.f32.xlu0 %v2466_v61 }
 0xf37   : > { %v2468_v62 = vpop.xlane.xlu0 %2467 }
 0xf38   : > { %v2469_v63 = vmul.f32 0.03125, %v2468_v62 }
 0xf3a   : > { %v2470_v2 = vadd.f32 1e-12, %v2469_v63 }
 0xf3c   : > { %4810 = vrsqrt.f32 %v2470_v2 }
 0xf46   : > { %v4811_v3 = vpop.eup %4810 }
 0xf47   : > { %v2472_v5 = vmul.f32 %v4811_v3, %v2464_v58 }
 0xf49   : > { %v2479_v7 = vmul.f32 %v6401_v4, %v2472_v5 }
 0xf4b   : > { %v6407_v8 = vadd.f32 %v6403_v6, %v2479_v7 }
 0xf4d   : > { %4410 = vmatmul.mubr.msk.f32.vlgmr.msra.gmra.mrb[14].mxu0 %vm1054_vm2, %v6407_v8 }
 0xf4e   : > { %4414 = vmatprep.mubr.msk.f32.mxu0 %vm5535_vm0, %v5536_v1 }
0x1020   : > { %v2556_v9 = vpop.f32.mrb[14].mxu0 }
0x1021   : > { %v2557_v10 = vadd.f32 %v6265_v35, %v2556_v9  ;;  %v4411_v12 = vpop.f32.mrb[15].mxu0 }
0x1023   : > { %2560 = vxpose.xlu1.b32.start.end [1/1] (short) (narrow) %v2557_v10, 96 }
0x10a3   : > { %v2576_v13 = vpop.trf.xlu1 }
0x10a4   : > { %2592 = vxpose.xlu0.b32.start.end [1/1] (short) (narrow) %v2576_v13, 8 }
0x10a7   : > { %v2577_v14 = vpop.trf.xlu1 }
0x10a8   : > { %2624 = vxpose.xlu0.b32.start.end [1/1] (short) (narrow) %v2577_v14, 8 }
0x10ab   : > { %v2578_v15 = vpop.trf.xlu1 }
0x10ac   : > { %2656 = vxpose.xlu0.b32.start.end [1/1] (short) (narrow) %v2578_v15, 8 }
0x10af   : > { %v2579_v16 = vpop.trf.xlu1 }
0x10b0   : > { %2688 = vxpose.xlu1.b32.start.end [1/1] (short) (narrow) %v2579_v16, 8 }
0x10b3   : > { %v2580_v17 = vpop.trf.xlu1 }
0x10b4   : > { %4413 = vmatpush3.msra.mxu0 %v2580_v17  ;;  %v2720_v37 = vmul.f32 %v2580_v17, %v2580_v17 }
0x10b5   : > { %4417 = vmatprep.subr.mxu0 %v5536_v1 }
0x10b6   : > { %v2724_v39 = vsel %vm1326_vm3, %v2720_v37, 0.0 }
0x10b7   : > { %v2581_v19 = vpop.trf.xlu1  ;;  %v2725_v50 = vrot.slane %v2724_v39, 4 }
0x10b8   : > { %v2721_v40 = vmul.f32 %v2581_v19, %v2581_v19 }
0x10b9   : > { %v2726_v43 = vadd.f32 %v2725_v50, %v2724_v39 }
0x10ba   : > { %v2731_v41 = vsel %vm1326_vm3, %v2721_v40, 0.0 }
0x10bb   : > { %v2582_v21 = vpop.trf.xlu1  ;;  %v2732_v44 = vrot.slane %v2731_v41, 4  ;;  %v2727_v48 = vrot.slane %v2726_v43, 2 }
0x10bc   : > { %4423 = vmatpush3.msra.mxu1 %v2582_v21  ;;  %v2722_v42 = vmul.f32 %v2582_v21, %v2582_v21 }
0x10bd   : > { %4432 = vmatprep.subr.mxu1 %v5536_v1  ;;  %v2733_v51 = vadd.f32 %v2732_v44, %v2731_v41  ;;  %v2728_v56 = vadd.f32 %v2727_v48, %v2726_v43 }
0x10be   : > { %v2738_v45 = vsel %vm1326_vm3, %v2722_v42, 0.0 }
0x10bf   : > { %v2583_v35 = vpop.trf.xlu1  ;;  %v2739_v53 = vrot.slane %v2738_v45, 4  ;;  %v2734_v57 = vrot.slane %v2733_v51, 2  ;;  %v2729_v61 = vrot.slane %v2728_v56, 1 }
0x10c0   : > { %v2723_v47 = vmul.f32 %v2583_v35, %v2583_v35 }
0x10c1   : > { %v2740_v58 = vadd.f32 %v2739_v53, %v2738_v45  ;;  %v2735_v62 = vadd.f32 %v2734_v57, %v2733_v51  ;;  %v2730_v9 = vadd.f32 %v2729_v61, %v2728_v56 }
0x10c2   : > { %v2745_v55 = vsel %vm1326_vm3, %v2723_v47, 0.0 }
0x10c3   : > { %v2584_v24 = vpop.trf.xlu1  ;;  %v2746_v59 = vrot.slane %v2745_v55, 4  ;;  %v2741_v63 = vrot.slane %v2740_v58, 2  ;;  %v2736_v3 = vrot.slane %v2735_v62, 1  ;;  %v2752_v13 = vmul.f32 0.17677669, %v2730_v9 }
0x10c5   : > { %v2747_v2 = vadd.f32 %v2746_v59, %v2745_v55  ;;  %v2742_v5 = vadd.f32 %v2741_v63, %v2740_v58  ;;  %v2737_v14 = vadd.f32 %v2736_v3, %v2735_v62  ;;  %v2756_v16 = vsub.f32 %v6298_v23, %v2752_v13 }
0x10c7   : > { %v2585_v26 = vpop.trf.xlu1  ;;  %v2748_v7 = vrot.slane %v2747_v2, 2  ;;  %v2743_v10 = vrot.slane %v2742_v5, 1  ;;  %v2753_v17 = vmul.f32 0.17677669, %v2737_v14  ;;  %v2767_v21 = vrot.slane %v2756_v16, %v6300_v30 }
0x10c9   : > { %v2749_v12 = vadd.f32 %v2748_v7, %v2747_v2 }
0x10cb   : > { %v6416_v29 = vpop.trf.xlu1  ;;  %v2750_v15 = vrot.slane %v2749_v12, 1 }
0x10cf   : > { %v6423_v32 = vpop.trf.xlu1 }
0x1124   : > { %v2608_v27 = vpop.trf.xlu0 }
0x1125   : > { %4415 = vmatmul.mubr.msk.f32.vlgmr.msra.gmra.mrb[16].mxu0 %vm1326_vm3, %v2608_v27 }
0x1126   : > { %4418 = vmatpush3.msra.mxu0 %v2581_v19  ;;  %4419 = vmatprep.mubr.msk.f32.mxu0 %vm5535_vm0, %v5536_v1  ;;  %v2744_v19 = vadd.f32 %v2743_v10, %v2742_v5 }
0x1127   : > { %4427 = vmatprep.subr.mxu0 %v5536_v1 }
0x1128   : > { %v2640_v31 = vpop.trf.xlu0 }
0x1129   : > { %4420 = vmatmul.mubr.msk.f32.vlgmr.msra.gmra.mrb[18].mxu0 %vm1326_vm3, %v2640_v31 }
0x112a   : > { %4428 = vmatpush3.msra.mxu0 %v2583_v35  ;;  %4429 = vmatprep.mubr.msk.f32.mxu0 %vm5535_vm0, %v5536_v1  ;;  %v2757_v35 = vsub.f32 %v6298_v23, %v2753_v17 }
0x112b   : > { %4437 = vmatprep.subr.mxu0 %v5536_v1 }
0x112c   : > { %v2672_v25 = vpop.trf.xlu0  ;;  %v2771_v37 = vrot.slane %v2757_v35, %v6300_v30 }
0x112d   : > { %4425 = vmatmul.mubr.msk.f32.vlgmr.msra.gmra.mrb[12].mxu1 %vm1326_vm3, %v2672_v25 }
0x112e   : > { %4433 = vmatpush3.xpose.msk.msra.mxu1 %vm1326_vm3, %v2584_v24  ;;  %4434 = vmatprep.mubr.msk.f32.mxu1 %vm5535_vm0, %v5536_v1  ;;  %v2754_v24 = vmul.f32 0.17677669, %v2744_v19 }
0x112f   : > { %4442 = vmatprep.subr.mxu1 %v5536_v1 }
0x1130   : > { %v2704_v36 = vpop.trf.xlu1  ;;  %v2758_v39 = vsub.f32 %v6298_v23, %v2754_v24 }
0x1131   : > { %4430 = vmatmul.mubr.msk.f32.vlgmr.msra.gmra.mrb[20].mxu0 %vm1326_vm3, %v2704_v36 }
0x1132   : > { %4438 = vmatpush3.xpose.msk.msra.mxu0 %vm1326_vm3, %v2585_v26  ;;  %4439 = vmatprep.mubr.msk.f32.mxu0 %vm5535_vm0, %v5536_v1  ;;  %v2751_v26 = vadd.f32 %v2750_v15, %v2749_v12  ;;  %v2775_v43 = vrot.slane %v2758_v39, %v6300_v30 }
0x1133   : > { %4447 = vmatprep.subr.mxu0 %v5536_v1 }
0x1134   : > { %v2755_v40 = vmul.f32 0.17677669, %v2751_v26 }
0x1136   : > { %v2759_v45 = vsub.f32 %v6298_v23, %v2755_v40 }
0x1138   : > { %v2779_v55 = vrot.slane %v2759_v45, %v6300_v30 }
0x11f8   : > { %v2853_v27 = vpop.f32.mrb[16].mxu0 }
0x11f9   : > { %v2854_v31 = vadd.f32 %v2853_v27, %v2767_v21  ;;  %v4416_v25 = vpop.f32.mrb[17].mxu0 }
0x11fb   : > { %v3076_v36 = vsel %vm1326_vm3, %v2854_v31, -inf }
0x11fc   : > { %3077 = vmax.xlane.f32.xlu0 %v3076_v36  ;;  %v2926_v50 = vpop.f32.mrb[18].mxu0 }
0x11fd   : > { %v2927_v41 = vadd.f32 %v2926_v50, %v2771_v37  ;;  %v4421_v42 = vpop.f32.mrb[19].mxu0 }
0x11ff   : > { %v3079_v44 = vsel %vm1326_vm3, %v2927_v41, -inf }
0x1200   : > { %v2999_v47 = vpop.f32.mrb[12].mxu1  ;;  %3080 = vmax.xlane.f32.xlu1 %v3079_v44 }
0x1201   : > { %v3000_v48 = vadd.f32 %v2999_v47, %v2775_v43  ;;  %v4426_v51 = vpop.f32.mrb[13].mxu1 }
0x1203   : > { %v3082_v53 = vsel %vm1326_vm3, %v3000_v48, -inf }
0x1204   : > { %3083 = vmax.xlane.f32.xlu0 %v3082_v53  ;;  %v3072_v56 = vpop.f32.mrb[20].mxu0 }
0x1205   : > { %v3073_v57 = vadd.f32 %v3072_v56, %v2779_v55  ;;  %v4431_v58 = vpop.f32.mrb[21].mxu0 }
0x1207   : > { %v3085_v59 = vsel %vm1326_vm3, %v3073_v57, -inf }
0x1208   : > { %3086 = vmax.xlane.f32.xlu0 %v3085_v59 }
0x1289   : > { %v3078_v61 = vpop.xlane.xlu0 %3077 }
0x128a   : > { %v3088_v62 = vsub.f32 %v2854_v31, %v3078_v61 }
0x128c   : > { %v3092_v63 = vmul.f32 1.442695, %v3088_v62 }
0x128d   : > { %v3081_v2 = vpop.xlane.xlu1 %3080 }
0x128e   : > { %4812 = vpow2.f32 %v3092_v63  ;;  %v3089_v23 = vsub.f32 %v2927_v41, %v3081_v2 }
0x1290   : > { %v3094_v3 = vmul.f32 1.442695, %v3089_v23 }
0x1291   : > { %v3084_v5 = vpop.xlane.xlu0 %3083 }
0x1292   : > { %4814 = vpow2.f32 %v3094_v3  ;;  %v3090_v7 = vsub.f32 %v3000_v48, %v3084_v5 }
0x1294   : > { %v3096_v9 = vmul.f32 1.442695, %v3090_v7 }
0x1295   : > { %v3087_v10 = vpop.xlane.xlu0 %3086 }
0x1296   : > { %4816 = vpow2.f32 %v3096_v9  ;;  %v3091_v30 = vsub.f32 %v3073_v57, %v3087_v10 }
0x1298   : > { %v4813_v12 = vpop.eup %4812  ;;  %v3098_v13 = vmul.f32 1.442695, %v3091_v30 }
0x1299   : > { %v3100_v14 = vsel %vm1326_vm3, %v4813_v12, 0.0 }
0x129a   : > { %4818 = vpow2.f32 %v3098_v13  ;;  %3101 = vadd.xlane.f32.xlu0 %v3100_v14 }
0x129c   : > { %v4815_v15 = vpop.eup %4814 }
0x129d   : > { %v3103_v16 = vsel %vm1326_vm3, %v4815_v15, 0.0 }
0x129e   : > { %3104 = vadd.xlane.f32.xlu0 %v3103_v16 }
0x12a0   : > { %v4817_v17 = vpop.eup %4816 }
0x12a1   : > { %v3106_v19 = vsel %vm1326_vm3, %v4817_v17, 0.0 }
0x12a2   : > { %3107 = vadd.xlane.f32.xlu0 %v3106_v19 }
0x12a4   : > { %v4819_v21 = vpop.eup %4818 }
0x12a5   : > { %v3109_v35 = vsel %vm1326_vm3, %v4819_v21, 0.0 }
0x12a6   : > { %3110 = vadd.xlane.f32.xlu0 %v3109_v35 }
0x1327   : > { %v3102_v24 = vpop.xlane.xlu0 %3101 }
0x1328   : > { %4820 = vrcp.f32 %v3102_v24 }
0x132b   : > { %v3105_v26 = vpop.xlane.xlu0 %3104 }
0x132c   : > { %4822 = vrcp.f32 %v3105_v26 }
0x132f   : > { %v3108_v27 = vpop.xlane.xlu0 %3107 }
0x1330   : > { %4824 = vrcp.f32 %v3108_v27 }
0x1332   : > { %v4821_v31 = vpop.eup %4820 }
0x1333   : > { %v3116_v25 = vmul.f32 %v4821_v31, %v4813_v12  ;;  %v3111_v36 = vpop.xlane.xlu0 %3110 }
0x1334   : > { %4826 = vrcp.f32 %v3111_v36 }
0x1335   : > { %4435 = vmatmul.mubr.msk.f32.vlgmr.msra.gmra.mrb[14].mxu1 %vm1326_vm3, %v3116_v25 }
0x1336   : > { %v4823_v37 = vpop.eup %4822  ;;  %4443 = vmatpush3.xpose.msk.msra.mxu1 %vm1326_vm3, %v6416_v29  ;;  %4444 = vmatprep.mubr.msk.f32.mxu1 %vm5535_vm0, %v5536_v1 }
0x1337   : > { %v3117_v39 = vmul.f32 %v4823_v37, %v4815_v15  ;;  %4532 = vmatprep.subr.bf16.mxu1 %v5534_v0 }
0x1339   : > { %4440 = vmatmul.mubr.msk.f32.vlgmr.msra.gmra.mrb[22].mxu0 %vm1326_vm3, %v3117_v39 }
0x133a   : > { %v4825_v40 = vpop.eup %4824  ;;  %4448 = vmatpush3.xpose.msk.msra.mxu0 %vm1326_vm3, %v6423_v32  ;;  %4449 = vmatprep.mubr.msk.f32.mxu0 %vm5535_vm0, %v5536_v1 }
0x133b   : > { %v3118_v50 = vmul.f32 %v4825_v40, %v4817_v17  ;;  %4538 = vmatprep.subr.bf16.mxu0 %v5534_v0 }
0x133d   : > { %4445 = vmatmul.mubr.msk.f32.vlgmr.msra.gmra.mrb[16].mxu1 %vm1326_vm3, %v3118_v50 }
0x133e   : > { %v4827_v29 = vpop.eup %4826  ;;  %4534 = vmatpush3.bf16.msra.mxu1 %v6336_v52  ;;  %4460 = vmatprep.mubr.msk.f32.mxu1 %vm5535_vm0, %v5536_v1 }
0x133f   : > { %v3119_v41 = vmul.f32 %v4827_v29, %v4819_v21  ;;  %4535 = vmatprep.subr.bf16.mxu1 %v5534_v0 }
0x1341   : > { %4450 = vmatmul.mubr.msk.f32.vlgmr.msra.gmra.mrb[24].mxu0 %vm1326_vm3, %v3119_v41 }
0x1342   : > { %4537 = vmatpush3.bf16.msra.mxu1 %v6339_v54  ;;  %4540 = vmatpush3.bf16.msra.mxu0 %v6353_v11 }
0x1343   : > { %4541 = vmatprep.subr.bf16.mxu0 %v5534_v0  ;;  %4471 = vmatprep.mubr.msk.f32.mxu0 %vm5535_vm0, %v5536_v1 }
0x1344   : > { %4544 = vmatprep.subr.bf16.mxu1 %v5534_v0 }
0x1346   : > { %4543 = vmatpush3.bf16.msra.mxu0 %v6357_v34 }
0x1408   : > { %v3192_v52 = vpop.f32.mrb[14].mxu1 }
0x1409   : > { %3424 = vxpose.xlu0.b32.start.end [1/1] (short) (narrow) %v3192_v52, 8  ;;  %v4436_v32 = vpop.f32.mrb[15].mxu1 }
0x140c   : > { %v3268_v42 = vpop.f32.mrb[22].mxu0 }
0x140d   : > { %3456 = vxpose.xlu1.b32.start.end [1/1] (short) (narrow) %v3268_v42, 8  ;;  %v4441_v43 = vpop.f32.mrb[23].mxu0 }
0x1410   : > { %v3344_v44 = vpop.f32.mrb[16].mxu1 }
0x1411   : > { %3488 = vxpose.xlu0.b32.start.end [1/1] (short) (narrow) %v3344_v44, 8  ;;  %v4446_v54 = vpop.f32.mrb[17].mxu1 }
0x1414   : > { %v3420_v45 = vpop.f32.mrb[24].mxu0 }
0x1415   : > { %3520 = vxpose.xlu0.b32.start.end [1/1] (short) (narrow) %v3420_v45, 8  ;;  %v4451_v11 = vpop.f32.mrb[25].mxu0 }
0x1489   : > { %v3440_v47 = vpop.trf.xlu0 }
0x148a   : > { %3552 = vxpose.xlu0.b32.start [1/4] (short) (narrow) %v3440_v47, 8 }
0x148d   : > { %v3472_v48 = vpop.trf.xlu1 }
0x148e   : > { %3553 = vxpose.xlu0.b32.cont [2/4] (short) (narrow) %v3472_v48, 8 }
0x1491   : > { %v3504_v51 = vpop.trf.xlu0 }
0x1492   : > { %3554 = vxpose.xlu0.b32.cont [3/4] (short) (narrow) %v3504_v51, 8 }
0x1495   : > { %v3536_v53 = vpop.trf.xlu0 }
0x1496   : > { %3555 = vxpose.xlu0.b32.end [4/4] (short) (narrow) %v3536_v53, 8 }
0x150a   : > { %v3568_v34 = vpop.trf.xlu0 }
0x150b   : > { %4461 = vmatmul.mubr.msk.f32.vlgmr.msra.gmra.mrb[18].mxu1 %vm1054_vm2, %v3568_v34 }
0x150c   : > { %4546 = vmatpush3.bf16.msra.mxu1 %v6374_v28  ;;  %4490 = vmatprep.mubr.msk.f32.mxu1 %vm5535_vm0, %v5536_v1 }
0x150d   : > { %4547 = vmatprep.subr.bf16.mxu1 %v5534_v0 }
0x1510   : > { %4549 = vmatpush3.bf16.msra.mxu1 %v6378_v22 }
0x1511   : > { %4550 = vmatprep.subr.bf16.mxu1 %v5534_v0 }
0x1514   : > { %4552 = vmatpush3.bf16.msra.mxu1 %v6382_v33 }
0x1515   : > { %4553 = vmatprep.subr.bf16.mxu1 %v5534_v0 }
0x1518   : > { %4555 = vmatpush3.bf16.msra.mxu1 %v6386_v38 }
0x15de   : > { %v3653_v55 = vpop.f32.mrb[18].mxu1 }
0x15df   : > { %v3654_v56 = vadd.f32 %v6347_v60, %v3653_v55  ;;  %v4462_v57 = vpop.f32.mrb[19].mxu1 }
0x15e1   : > { %v3657_v28 = vadd.f32 %v3654_v56, %v6407_v8 }
0x15e3   : > { %v3658_v1 = vsel %vm1054_vm2, %v3657_v28, 0.0 }
0x15e4   : > { %3659 = vadd.xlane.f32.xlu1 %v3658_v1 }
0x1671   : > { %v3660_v58 = vpop.xlane.xlu1 %3659 }
0x1672   : > { %v3661_v59 = vmul.f32 0.03125, %v3660_v58 }
0x1674   : > { %v3662_v22 = vsub.f32 %v3657_v28, %v3661_v59 }
0x1676   : > { %v3663_v61 = vmul.f32 %v3662_v22, %v3662_v22 }
0x1678   : > { %v3664_v62 = vsel %vm1054_vm2, %v3663_v61, 0.0 }
0x1679   : > { %3665 = vadd.xlane.f32.xlu0 %v3664_v62 }
0x1706   : > { %v3666_v33 = vpop.xlane.xlu0 %3665 }
0x1707   : > { %v3667_v0 = vmul.f32 0.03125, %v3666_v33 }
0x1709   : > { %v3668_v63 = vadd.f32 1e-12, %v3667_v0 }
0x170b   : > { %4828 = vrsqrt.f32 %v3668_v63 }
0x1715   : > { %v4829_v38 = vpop.eup %4828 }
0x1716   : > { %v3670_v2 = vmul.f32 %v4829_v38, %v3662_v22 }
0x1718   : > { %v3671_v60 = vmul.f32 %v6361_v18, %v3670_v2 }
0x171a   : > { %v3672_v8 = vadd.f32 %v6363_v20, %v3671_v60 }
0x171c   : > { %4472 = vmatmul.mubr.msk.f32.vlgmr.msra.gmra.mrb[26].mxu0 %vm1054_vm2, %v3672_v8 }
0x17ef   : > { %v3742_v23 = vpop.f32.mrb[26].mxu0 }
0x17f0   : > { %v3743_v3 = vadd.f32 %v6390_v49, %v3742_v23  ;;  %v4473_v5 = vpop.f32.mrb[27].mxu0 }
0x17f2   : > { %v3747_v7 = vmul.f32 0.70710677, %v3743_v3  ;;  %v3746_v10 = vmul.f32 0.5, %v3743_v3 }
0x17f4   : > { %4830 = verf.f32 %v3747_v7 }
0x17fe   : > { %v4831_v9 = vpop.eup %4830 }
0x17ff   : > { %v3749_v30 = vadd.f32 1.0, %v4831_v9 }
0x1801   : > { %v3750_v12 = vmul.f32 %v3749_v30, %v3746_v10 }
0x1803   : > { %4491 = vmatmul.mubr.msk.f32.vlgmr.msra.gmra.mrb[20].mxu1 %vm2385_vm4, %v3750_v12 }
0x18d6   : > { %v3820_v13 = vpop.f32.mrb[20].mxu1 }
0x18d7   : > { %v3821_v14 = vadd.f32 %v6396_v46, %v3820_v13  ;;  %v4492_v18 = vpop.f32.mrb[21].mxu1 }
0x18d9   : > { %v3824_v20 = vadd.f32 %v3821_v14, %v3672_v8 }
0x18db   : > { %v3825_v15 = vsel %vm1054_vm2, %v3824_v20, 0.0 }
0x18dc   : > { %3826 = vadd.xlane.f32.xlu1 %v3825_v15 }
0x1969   : > { %v3827_v49 = vpop.xlane.xlu1 %3826 }
0x196a   : > { %v3828_v16 = vmul.f32 0.03125, %v3827_v49 }
0x196c   : > { %v3829_v17 = vsub.f32 %v3824_v20, %v3828_v16 }
0x196e   : > { %v3830_v19 = vmul.f32 %v3829_v17, %v3829_v17 }
0x1970   : > { %v3831_v21 = vsel %vm1054_vm2, %v3830_v19, 0.0 }
0x1971   : > { %3832 = vadd.xlane.f32.xlu1 %v3831_v21 }
0x19fe   : > { %v3833_v35 = vpop.xlane.xlu1 %3832 }
0x19ff   : > { %v3834_v24 = vmul.f32 0.03125, %v3833_v35 }
0x1a01   : > { %v3835_v26 = vadd.f32 1e-12, %v3834_v24 }
0x1a03   : > { %4832 = vrsqrt.f32 %v3835_v26 }
0x1a0d   : > { %v4833_v46 = vpop.eup %4832 }
0x1a0e   : > { %v3837_v27 = vmul.f32 %v4833_v46, %v3829_v17 }
0x1a10   : > { %v3838_v31 = vmul.f32 %v6401_v4, %v3837_v27 }
0x1a12   : > { %v3839_v25 = vadd.f32 %v6403_v6, %v3838_v31 }
0x1a14   : > { %3840 = vst.msk [vmem:[%s932_s21] sm:$0xff] %vm1054_vm2, %v3839_v25 }
0x1a15   : > { %5413 = shalt.err (!%p5410_p3)
}
0x1a16   : > { %s5414_s27 = scalar_lea.hbm %s6512_s29, 128  ;;  %s5418_s0 = scalar_lea.hbm %s6703_s14, 256 }
0x1a17   : > { %p5415_p4 = scmp.ne.s32.totalorder %s6512_s29, %s5414_s27  ;;  %p5419_p9 = scmp.lt.u32.totalorder %s6512_s29, %s6703_s14 }
0x1a18   : > { %p5420_p11 = scmp.lt.u32.totalorder %s5418_s0, %s5414_s27  ;;  %p5422_p6 = scmp.lt.u32.totalorder %s5414_s27, %s6512_s29 }
0x1a19   : > { %p5416_p5 = pnand %p5415_p4, %p6704_p7 }
0x1a1a   : > { %p5421_p0 = por %p5420_p11, %p5419_p9 }
0x1a1b   : > { %p5417_p8 = pneg %p5416_p5 }
0x1a1c   : > { %p5423_p13 = por %p5422_p6, %p5421_p0 }
0x1a1e   : > { %p5424_p12 = pnand %p5423_p13, %p5417_p8 }
0x1a20   : > { %5427 = shalt.err (!%p5424_p12)
}
0x1a21   : > { %4630 = dma.vmem_to_hbm [thread:$0]  (%p6704_p7), %s6514_s4, 128, %s6512_s29, %s3842_s18  }
0x1a22 PF: > { %s6705_s6 = sld [smem:[#allocation47_spill]]  ;;  %s6706_s23 = sld [smem:[#allocation56_spill]] }
0x1a23   : > { %s6707_s24 = sld [smem:[#allocation50_spill]] }
0x1a28   : > { %s3867_s28 = sand.u32 1, %s6705_s6   ;;  %p6708_p1 = scmp.ne.s32.totalorder %s6706_s23, 0 }
0x1a29   : > { %p6709_p10 = scmp.ge.s32.totalorder %s6707_s24, 2  ;;  %s3868_s1 = scalar_lea.sflag [#allocation4], %s3867_s28 }
0x1a2b   : > { %p4695_p2 = pnand %p6709_p10, %p6708_p1 }
0x1a2d   : > { %5493 = dma.done.wait (!%p4695_p2), %s3868_s1, 128  }
0x1a2e   : > { %5495 = vsyncadd (!%p4695_p2), %s3868_s1, 4294967168  ;;  %s6710_s24 = sld [smem:[#allocation52_spill]]  ;;  %s6711_s1 = sld [smem:[#allocation48_spill]] }
0x1a2f   : > { %s6712_s22 = sld [smem:[#allocation49_spill]]  ;;  %s6713_s23 = sld [smem:[#allocation53_spill]] }
0x1a34   : > { %p42_p3 = scmp.ge.s32.totalorder %s6710_s24, 4  }
0x1a36   :  { %44 = sbr.rel (!%p42_p3) target bundleno = 29 (0x1d), region = 235 }
0x1a3d   :  { %3873 = vsyncpa [#allocation3], 1 }
0x1a3e   :  { %3875 = vsyncpa [#allocation3 + $0x1], 1 }
0x1a3f   :  { %3876 = vsyncpa [#allocation6], 1 }
0x1a40   :  { %3877 = vsyncpa [#allocation11], 1 }
0x1a41   :  { %3878 = vsyncpa [#allocation14], 1 }
0x1a42   :  { %3879 = vsyncpa [#allocation17], 1 }
0x1a43   :  { %3880 = vsyncpa [#allocation20], 1 }
0x1a44   :  { %3881 = vsyncpa [#allocation23], 1 }
0x1a45   :  { %3882 = vsyncpa [#allocation26], 1 }
0x1a46   :  { %3883 = vsyncpa [#allocation29], 1 }
0x1a47   :  { %3884 = vsyncpa [#allocation32], 1 }
0x1a48   :  { %3885 = vsyncpa [#allocation4], 1 }
0x1a49   :  { %3887 = vsyncpa [#allocation4 + $0x1], 1 }

</bundles_post_ra>
